<compile_context>
chip_gen: v6e
topology: v6e:2x2x1
jax: 0.10.0
libtpu: 0.0.40
codegen_flags: <defaults>
</compile_context>

<pallas_src>
import jax
import jax.numpy as jnp
from jax.experimental import pallas as pl
from jax.experimental.pallas import tpu as pltpu

EPS = 1e-5  # PyTorch BatchNorm1d default eps


def _round_up(x, m):
    return (x + m - 1) // m * m


def _mlp_kernel(x_ref, w1_ref, b1_ref, w2_ref, b2_ref, w3_ref, b3_ref,
                o_ref, acc_ref):
    k = pl.program_id(1)

    # --- fc1: reduce over the tiled input-feature axis, accumulate f32 in VMEM ---
    @pl.when(k == 0)
    def _():
        acc_ref[...] = jnp.zeros_like(acc_ref)

    acc_ref[...] += jnp.dot(x_ref[...], w1_ref[...],
                            preferred_element_type=jnp.float32)

    # --- last reduction step: (BN-folded) bias + ReLU, then fc2 and fc3 ---
    @pl.when(k == pl.num_programs(1) - 1)
    def _():
        h1 = jnp.maximum(acc_ref[...] + b1_ref[...], 0.0)
        h2 = jnp.dot(h1.astype(jnp.bfloat16), w2_ref[...],
                     preferred_element_type=jnp.float32) + b2_ref[...]
        h2 = jnp.maximum(h2, 0.0)
        out = jnp.dot(h2.astype(jnp.bfloat16), w3_ref[...],
                      preferred_element_type=jnp.float32) + b3_ref[...]
        o_ref[...] = out.astype(o_ref.dtype)


def pack_params(p, *, tk=2048):
    """One-time weight prep: fold eval-mode BN into the Linears, transpose,
    cast to bf16 and pad to tile / lane boundaries.  Call once and reuse the
    result across forward calls (this is as expensive as the kernel itself for
    the real 38410x512 fc1 weight, so it must not sit on the per-call path)."""
    H, D = p["w1"].shape
    C = p["w3"].shape[0]
    assert H % 128 == 0, "hidden width must be lane-aligned"

    tk = min(tk, _round_up(D, 128))
    D_pad = _round_up(D, tk)
    C_pad = _round_up(max(C, 128), 128)      # lane-dense output slab

    def fold(w, b, g, beta, m, v):
        s = (g / jnp.sqrt(v + EPS)).astype(jnp.float32)
        w_f = w.astype(jnp.float32) * s[:, None]
        b_f = (b.astype(jnp.float32) - m) * s + beta
        return w_f, b_f

    w1f, b1f = fold(p["w1"], p["b1"], p["g1"], p["be1"], p["m1"], p["v1"])
    w2f, b2f = fold(p["w2"], p["b2"], p["g2"], p["be2"], p["m2"], p["v2"])

    w1t = jnp.pad(w1f.T.astype(jnp.bfloat16), ((0, D_pad - D), (0, 0)))  # (D_pad, H)
    w2t = w2f.T.astype(jnp.bfloat16)                                     # (H, H)
    w3t = jnp.pad(p["w3"].T.astype(jnp.bfloat16), ((0, 0), (0, C_pad - C)))
    b1r = b1f.reshape(1, H).astype(jnp.float32)
    b2r = b2f.reshape(1, H).astype(jnp.float32)
    b3r = jnp.pad(p["b3"].astype(jnp.float32).reshape(1, C),
                  ((0, 0), (0, C_pad - C)))

    return {"w1t": w1t, "w2t": w2t, "w3t": w3t,
            "b1": b1r, "b2": b2r, "b3": b3r,
            "D": D, "H": H, "C": C, "C_pad": C_pad, "tk": tk}


def joint_domain_discriminator_forward_packed(x, packed, *, tn=256):
    """x: (N, D) float32, packed = pack_params(p). Returns (N, C) float32."""
    N, D = x.shape
    assert D == packed["D"]
    H, C, C_pad, tk = packed["H"], packed["C"], packed["C_pad"], packed["tk"]
    D_pad = packed["w1t"].shape[0]

    # Batch tile: multiple of 16 (bf16 sublane packing); single tile for small N
    # so the large w1 slab is streamed from HBM exactly once.
    tn = min(tn, _round_up(N, 16))
    N_pad = _round_up(N, tn)

    # Single-pass cast + tail pad (no full zero slab + scatter).
    x_p = jnp.pad(x.astype(jnp.bfloat16), ((0, N_pad - N), (0, D_pad - D)))

    grid = (N_pad // tn, D_pad // tk)

    # Explicit VMEM budget: double-buffered x / w1 tiles, resident fc2/fc3
    # weights, f32 accumulator, output, plus epilogue temporaries headroom.
    vmem_est = (2 * tn * tk * 2 + 2 * tk * H * 2 + 2 * H * H * 2
                + 2 * H * C_pad * 2 + tn * H * 4 + 2 * tn * C_pad * 4
                + 4 * tn * H * 4)
    vmem_limit = min(max(int(1.5 * vmem_est), 32 * 1024 * 1024),
                     40 * 1024 * 1024)   # <= 40 MiB: safe on v7x's 64 MiB VMEM

    out = pl.pallas_call(
        _mlp_kernel,
        out_shape=jax.ShapeDtypeStruct((N_pad, C_pad), jnp.float32),
        grid_spec=pltpu.PrefetchScalarGridSpec(
            num_scalar_prefetch=0,
            grid=grid,
            in_specs=[
                pl.BlockSpec((tn, tk), lambda i, k: (i, k)),      # x tile
                pl.BlockSpec((tk, H), lambda i, k: (k, 0)),       # fc1 weight slab
                pl.BlockSpec((1, H), lambda i, k: (0, 0)),        # fc1 bias (BN folded)
                pl.BlockSpec((H, H), lambda i, k: (0, 0)),        # fc2 weight (resident)
                pl.BlockSpec((1, H), lambda i, k: (0, 0)),        # fc2 bias (BN folded)
                pl.BlockSpec((H, C_pad), lambda i, k: (0, 0)),    # fc3 weight (lane-padded)
                pl.BlockSpec((1, C_pad), lambda i, k: (0, 0)),    # fc3 bias (lane-padded)
            ],
            out_specs=pl.BlockSpec((tn, C_pad), lambda i, k: (i, 0)),
            scratch_shapes=[pltpu.VMEM((tn, H), jnp.float32)],    # fc1 accumulator
        ),
        compiler_params=pltpu.CompilerParams(
            dimension_semantics=("parallel", "arbitrary"),
            vmem_limit_bytes=vmem_limit),
    )(x_p, packed["w1t"], packed["b1"], packed["w2t"], packed["b2"],
      packed["w3t"], packed["b3"])

    return out[:N, :C]


def joint_domain_discriminator_forward(x, p, *, tn=256, tk=2048):
    """Convenience one-shot wrapper (prefer pack_params + *_forward_packed)."""
    return joint_domain_discriminator_forward_packed(x, pack_params(p, tk=tk), tn=tn)


def ref_forward(x, p):
    """Pure-JAX f32 reference (eval-mode forward)."""
    def bn(z, g, b, m, v):
        return (z - m) / jnp.sqrt(v + EPS) * g + b

    h = jnp.maximum(
        bn(x @ p["w1"].T + p["b1"], p["g1"], p["be1"], p["m1"], p["v1"]), 0.0)
    h = jnp.maximum(
        bn(h @ p["w2"].T + p["b2"], p["g2"], p["be2"], p["m2"], p["v2"]), 0.0)
    return h @ p["w3"].T + p["b3"]


if __name__ == "__main__":
    # Small stand-in for Linear(512*75+10, 512) -> BN -> ReLU -> Linear(512, 512)
    # -> BN -> ReLU -> Linear(512, 5): keep hidden=512 and num_classes=5,
    # shrink the huge input dim to a mini 522 (= 512 + 10).
    N, D_in, H, C = 16, 522, 512, 5

    ks = jax.random.split(jax.random.PRNGKey(0), 15)
    p = {
        "w1": jax.random.normal(ks[0], (H, D_in), jnp.float32) / jnp.sqrt(D_in),
        "b1": jax.random.normal(ks[1], (H,), jnp.float32) * 0.05,
        "g1": jax.random.normal(ks[2], (H,), jnp.float32) * 0.1 + 1.0,
        "be1": jax.random.normal(ks[3], (H,), jnp.float32) * 0.1,
        "m1": jax.random.normal(ks[4], (H,), jnp.float32) * 0.1,
        "v1": jax.random.uniform(ks[5], (H,), jnp.float32, 0.5, 1.5),
        "w2": jax.random.normal(ks[6], (H, H), jnp.float32) / jnp.sqrt(H),
        "b2": jax.random.normal(ks[7], (H,), jnp.float32) * 0.05,
        "g2": jax.random.normal(ks[8], (H,), jnp.float32) * 0.1 + 1.0,
        "be2": jax.random.normal(ks[9], (H,), jnp.float32) * 0.1,
        "m2": jax.random.normal(ks[10], (H,), jnp.float32) * 0.1,
        "v2": jax.random.uniform(ks[11], (H,), jnp.float32, 0.5, 1.5),
        "w3": jax.random.normal(ks[12], (C, H), jnp.float32) / jnp.sqrt(H),
        "b3": jax.random.normal(ks[13], (C,), jnp.float32) * 0.05,
    }
    x = jax.random.normal(ks[14], (N, D_in), jnp.float32)

    # One-time weight prep (hoisted off the per-call path); tk=256 here so the
    # mini D=522 still exercises a multi-step reduction grid (D_pad=768 -> 3
    # steps).  Real-model default tk=2048 gives ~19 steps over D=38410.
    packed = jax.tree_util.tree_map(jax.block_until_ready, pack_params(p, tk=256))

    # N=16 -> tn=16: single batch tile, w1 streamed exactly once.
    out = jax.block_until_ready(
        joint_domain_discriminator_forward_packed(x, packed, tn=256))
    ref = ref_forward(x, p)

    assert out.shape == (N, C), out.shape
    max_err = float(jnp.max(jnp.abs(out - ref)))
    # bf16 MXU operands vs f32 reference over three stacked matmuls.
    assert max_err < 1e-1, f"max abs err {max_err}"
    print("KERNEL_OK")
</pallas_src>

<mosaic_0001>
module attributes {stable_mosaic.version = 11 : i64} {
  func.func @_mlp_kernel(%arg0: i32, %arg1: i32, %arg2: memref<16x256xbf16, #tpu.memory_space<vmem>>, %arg3: memref<256x512xbf16, #tpu.memory_space<vmem>>, %arg4: memref<1x512xf32, #tpu.memory_space<vmem>>, %arg5: memref<512x512xbf16, #tpu.memory_space<vmem>>, %arg6: memref<1x512xf32, #tpu.memory_space<vmem>>, %arg7: memref<512x128xbf16, #tpu.memory_space<vmem>>, %arg8: memref<1x128xf32, #tpu.memory_space<vmem>>, %arg9: memref<16x128xf32, #tpu.memory_space<vmem>>, %arg10: memref<16x512xf32, #tpu.memory_space<vmem>>) attributes {dimension_semantics = [#tpu.dimension_semantics<parallel>, #tpu.dimension_semantics<arbitrary>], iteration_bounds = array<i64: 1, 3>, scalar_prefetch = 0 : i64, scratch_operands = 1 : i64, tpu.core_type = #tpu.core_type<tc>, window_params = [{transform_indices = @transform_0, window_bounds = array<i64: 16, 256>}, {transform_indices = @transform_1, window_bounds = array<i64: 256, 512>}, {pipeline_mode = #tpu.pipeline_mode<synchronous>, transform_indices = @transform_2, window_bounds = array<i64: 1, 512>}, {pipeline_mode = #tpu.pipeline_mode<synchronous>, transform_indices = @transform_3, window_bounds = array<i64: 512, 512>}, {pipeline_mode = #tpu.pipeline_mode<synchronous>, transform_indices = @transform_4, window_bounds = array<i64: 1, 512>}, {pipeline_mode = #tpu.pipeline_mode<synchronous>, transform_indices = @transform_5, window_bounds = array<i64: 512, 128>}, {pipeline_mode = #tpu.pipeline_mode<synchronous>, transform_indices = @transform_6, window_bounds = array<i64: 1, 128>}, {transform_indices = @transform_7, window_bounds = array<i64: 16, 128>}]} {
    %c0_i32 = arith.constant 0 : i32
    %0 = arith.cmpi eq, %arg1, %c0_i32 : i32
    %1 = arith.extui %0 : i1 to i32
    %c0_i32_0 = arith.constant 0 : i32
    %2 = arith.cmpi ne, %1, %c0_i32_0 : i32
    scf.if %2 {
      %cst_9 = arith.constant 0.000000e+00 : f32
      %12 = vector.broadcast %cst_9 : f32 to vector<16x512xf32>
      %c0_10 = arith.constant 0 : index
      %c0_11 = arith.constant 0 : index
      %13 = vector.load %arg10[%c0_10, %c0_11] : memref<16x512xf32, #tpu.memory_space<vmem>>, vector<16x512xf32>
      tpu.vector_store %arg10[%c0_10, %c0_11], %12 {strides = array<i32>} : memref<16x512xf32, #tpu.memory_space<vmem>>, vector<16x512xf32>,
    } else {
    }
    %c0 = arith.constant 0 : index
    %c0_1 = arith.constant 0 : index
    %3 = vector.load %arg10[%c0, %c0_1] : memref<16x512xf32, #tpu.memory_space<vmem>>, vector<16x512xf32>
    %c0_2 = arith.constant 0 : index
    %c0_3 = arith.constant 0 : index
    %4 = vector.load %arg2[%c0_2, %c0_3] : memref<16x256xbf16, #tpu.memory_space<vmem>>, vector<16x256xbf16>
    %c0_4 = arith.constant 0 : index
    %c0_5 = arith.constant 0 : index
    %5 = vector.load %arg3[%c0_4, %c0_5] : memref<256x512xbf16, #tpu.memory_space<vmem>>, vector<256x512xbf16>
    %cst = arith.constant dense<0.000000e+00> : vector<16x512xf32>
    %6 = tpu.matmul %4, %5, %cst {dimension_numbers = #tpu.dot_dimension_numbers<[1], [0], [0], [1], [0, 0, 1, 1], [], []>} : vector<16x256xbf16>, vector<256x512xbf16>, vector<16x512xf32> -> vector<16x512xf32>
    %7 = arith.addf %3, %6 : vector<16x512xf32>
    %c0_6 = arith.constant 0 : index
    %c0_7 = arith.constant 0 : index
    %8 = vector.load %arg10[%c0_6, %c0_7] : memref<16x512xf32, #tpu.memory_space<vmem>>, vector<16x512xf32>
    tpu.vector_store %arg10[%c0_6, %c0_7], %7 {strides = array<i32>} : memref<16x512xf32, #tpu.memory_space<vmem>>, vector<16x512xf32>,
    %c2_i32 = arith.constant 2 : i32
    %9 = arith.cmpi eq, %arg1, %c2_i32 : i32
    %10 = arith.extui %9 : i1 to i32
    %c0_i32_8 = arith.constant 0 : i32
    %11 = arith.cmpi ne, %10, %c0_i32_8 : i32
    scf.if %11 {
      %c0_9 = arith.constant 0 : index
      %c0_10 = arith.constant 0 : index
      %12 = vector.load %arg10[%c0_9, %c0_10] : memref<16x512xf32, #tpu.memory_space<vmem>>, vector<16x512xf32>
      %c0_11 = arith.constant 0 : index
      %c0_12 = arith.constant 0 : index
      %13 = vector.load %arg4[%c0_11, %c0_12] : memref<1x512xf32, #tpu.memory_space<vmem>>, vector<1x512xf32>
      %14 = vector.broadcast %13 : vector<1x512xf32> to vector<16x512xf32>
      %15 = arith.addf %12, %14 : vector<16x512xf32>
      %cst_13 = arith.constant 0.000000e+00 : f32
      %16 = vector.broadcast %cst_13 : f32 to vector<16x512xf32>
      %17 = arith.maximumf %15, %16 : vector<16x512xf32>
      %18 = arith.truncf %17 : vector<16x512xf32> to vector<16x512xbf16>
      %c0_14 = arith.constant 0 : index
      %c0_15 = arith.constant 0 : index
      %19 = vector.load %arg5[%c0_14, %c0_15] : memref<512x512xbf16, #tpu.memory_space<vmem>>, vector<512x512xbf16>
      %cst_16 = arith.constant dense<0.000000e+00> : vector<16x512xf32>
      %20 = tpu.matmul %18, %19, %cst_16 {dimension_numbers = #tpu.dot_dimension_numbers<[1], [0], [0], [1], [0, 0, 1, 1], [], []>} : vector<16x512xbf16>, vector<512x512xbf16>, vector<16x512xf32> -> vector<16x512xf32>
      %c0_17 = arith.constant 0 : index
      %c0_18 = arith.constant 0 : index
      %21 = vector.load %arg6[%c0_17, %c0_18] : memref<1x512xf32, #tpu.memory_space<vmem>>, vector<1x512xf32>
      %22 = vector.broadcast %21 : vector<1x512xf32> to vector<16x512xf32>
      %23 = arith.addf %20, %22 : vector<16x512xf32>
      %cst_19 = arith.constant 0.000000e+00 : f32
      %24 = vector.broadcast %cst_19 : f32 to vector<16x512xf32>
      %25 = arith.maximumf %23, %24 : vector<16x512xf32>
      %26 = arith.truncf %25 : vector<16x512xf32> to vector<16x512xbf16>
      %c0_20 = arith.constant 0 : index
      %c0_21 = arith.constant 0 : index
      %27 = vector.load %arg7[%c0_20, %c0_21] : memref<512x128xbf16, #tpu.memory_space<vmem>>, vector<512x128xbf16>
      %cst_22 = arith.constant dense<0.000000e+00> : vector<16x128xf32>
      %28 = tpu.matmul %26, %27, %cst_22 {dimension_numbers = #tpu.dot_dimension_numbers<[1], [0], [0], [1], [0, 0, 1, 1], [], []>} : vector<16x512xbf16>, vector<512x128xbf16>, vector<16x128xf32> -> vector<16x128xf32>
      %c0_23 = arith.constant 0 : index
      %c0_24 = arith.constant 0 : index
      %29 = vector.load %arg8[%c0_23, %c0_24] : memref<1x128xf32, #tpu.memory_space<vmem>>, vector<1x128xf32>
      %30 = vector.broadcast %29 : vector<1x128xf32> to vector<16x128xf32>
      %31 = arith.addf %28, %30 : vector<16x128xf32>
      %c0_25 = arith.constant 0 : index
      %c0_26 = arith.constant 0 : index
      %32 = vector.load %arg9[%c0_25, %c0_26] : memref<16x128xf32, #tpu.memory_space<vmem>>, vector<16x128xf32>
      tpu.vector_store %arg9[%c0_25, %c0_26], %31 {strides = array<i32>} : memref<16x128xf32, #tpu.memory_space<vmem>>, vector<16x128xf32>,
    } else {
    }
    return
  }
  func.func @transform_0(%arg0: i32, %arg1: i32) -> (i32, i32) {
    %c0_i32 = arith.constant 0 : i32
    return %arg0, %arg1 : i32, i32
  }
  func.func @transform_1(%arg0: i32, %arg1: i32) -> (i32, i32) {
    %c0_i32 = arith.constant 0 : i32
    %c0_i32_0 = arith.constant 0 : i32
    return %arg1, %c0_i32 : i32, i32
  }
  func.func @transform_2(%arg0: i32, %arg1: i32) -> (i32, i32) {
    %c0_i32 = arith.constant 0 : i32
    %c0_i32_0 = arith.constant 0 : i32
    %c0_i32_1 = arith.constant 0 : i32
    return %c0_i32, %c0_i32_0 : i32, i32
  }
  func.func @transform_3(%arg0: i32, %arg1: i32) -> (i32, i32) {
    %c0_i32 = arith.constant 0 : i32
    %c0_i32_0 = arith.constant 0 : i32
    %c0_i32_1 = arith.constant 0 : i32
    return %c0_i32, %c0_i32_0 : i32, i32
  }
  func.func @transform_4(%arg0: i32, %arg1: i32) -> (i32, i32) {
    %c0_i32 = arith.constant 0 : i32
    %c0_i32_0 = arith.constant 0 : i32
    %c0_i32_1 = arith.constant 0 : i32
    return %c0_i32, %c0_i32_0 : i32, i32
  }
  func.func @transform_5(%arg0: i32, %arg1: i32) -> (i32, i32) {
    %c0_i32 = arith.constant 0 : i32
    %c0_i32_0 = arith.constant 0 : i32
    %c0_i32_1 = arith.constant 0 : i32
    return %c0_i32, %c0_i32_0 : i32, i32
  }
  func.func @transform_6(%arg0: i32, %arg1: i32) -> (i32, i32) {
    %c0_i32 = arith.constant 0 : i32
    %c0_i32_0 = arith.constant 0 : i32
    %c0_i32_1 = arith.constant 0 : i32
    return %c0_i32, %c0_i32_0 : i32, i32
  }
  func.func @transform_7(%arg0: i32, %arg1: i32) -> (i32, i32) {
    %c0_i32 = arith.constant 0 : i32
    %c0_i32_0 = arith.constant 0 : i32
    return %arg0, %c0_i32 : i32, i32
  }
}

</mosaic_0001>

<bundles_post_ra>
// kernel: tpu_custom_call.1
= control target key start
LH: loop header
LB: loop body
LE: loop exit
PB: predicated region body
PF: predicated region fallthrough
CT: control target
= control target key end

     0   :  { %s3715_s0 = inlined_call_operand.hbm [shape: bf16[16,768], index: 0, kind: input, shape index: {}]   ;;  %s3716_s1 = inlined_call_operand.hbm [shape: bf16[768,512], index: 1, kind: input, shape index: {}]   ;;  %s3717_s2 = inlined_call_operand.hbm [shape: f32[1,512], index: 2, kind: input, shape index: {}]   ;;  %s3718_s3 = inlined_call_operand.hbm [shape: bf16[512,512], index: 3, kind: input, shape index: {}]   ;;  %s3719_s4 = inlined_call_operand.vmem [shape: f32[1,512], index: 4, kind: input, shape index: {}]   ;;  %s3720_s5 = inlined_call_operand.hbm [shape: bf16[512,128], index: 5, kind: input, shape index: {}]   ;;  %s3721_s6 = inlined_call_operand.vmem [shape: f32[1,128], index: 6, kind: input, shape index: {}]   ;;  %s3722_s7 = inlined_call_operand.hbm [shape: f32[16,128], index: 7, kind: output, shape index: {}]  }
   0x1   :  { %3730 = sst [smem:[#allocation21_spill]] %s3715_s0 }
   0x2   :  { %3731 = sst [smem:[#allocation22_spill]] %s3717_s2 }
   0x3   :  { %3732 = sst [smem:[#allocation23_spill]] %s3718_s3 }
   0x4   :  { %3733 = sst [smem:[#allocation24_spill]] %s3720_s5 }
   0x5   :  { %12 = vsyncpa [#allocation4], 0 }
   0x6   :  { %14 = vsyncpa [#allocation4 + $0x1], 0 }
   0x7   :  { %15 = vsyncpa [#allocation7], 0 }
   0x8   :  { %17 = vsyncpa [#allocation7 + $0x1], 0 }
   0x9   :  { %18 = vsyncpa [#allocation10], 0 }
   0xa   :  { %19 = vsyncpa [#allocation5], 0  ;;  %s3426_s24 = smov 0   ;;  %s3428_s25 = smov 0  }
   0xb   :  { %s3430_s26 = smov 0   ;;  %s3432_s27 = smov 0  }
   0xc   :  { %s3434_s28 = smov 0   ;;  %s3436_s29 = smov 0  }
   0xd LB: > { %3734 = sst [smem:[#allocation18_spill]] %s3356_s26  ;;  %s3455_s30 = sadd.s32 4294967295, %s3368_s29   ;;  %s3368_s29 = sphi %s3436_s29, %s25_s29   ;;  %s3364_s28 = sphi %s3434_s28, %s3759_s28   ;;  %s3360_s27 = sphi %s3432_s27, %s3758_s27   ;;  %s3356_s26 = sphi %s3430_s26, %s3754_s26   ;;  %s3352_s25 = sphi %s3428_s25, %s3757_s25   ;;  %s3348_s24 = sphi %s3426_s24, %s3756_s24  }
   0xe   : > { %s46_s8 = sadd.s32 1, %s3356_s26  ;;  %p53_p0 = scmp.ne.s32.totalorder %s3356_s26, %s3352_s25 }
   0xf   : > { %p54_p1 = scmp.eq.s32.totalorder %s3368_s29, 0  ;;  %p59_p2 = scmp.ne.s32.totalorder %s3352_s25, %s3348_s24 }
  0x10   : > { %p3723_p3 = scmp.eq.s32.totalorder %s3455_s30, 0  ;;  %p2415_p5 = scmp.ge.s32.totalorder %s3368_s29, 1 }
  0x11   : > { %p55_p4 = por %p54_p1, %p53_p0  ;;  %p227_p7 = scmp.lt.s32.totalorder %s3368_s29, 4 }
  0x12   : > { %p3466_p6 = por %p3723_p3, %p59_p2  ;;  %s3370_s11 = smov [#allocation8]  }
  0x13   : > { %p3471_p8 = pnand %p2415_p5, %p227_p7  ;;  %s240_s12 = sshll.u32 %s3370_s11, 4  ;;  %s241_s12 = int_to_ptr.vmem [resolvable:$true] %s240_s12 }
  0x14   : > { %s3735_s9 = scalar_select %p3466_p6, 1, 0 }
  0x15   : > { %s3736_s10 = scalar_select %p3471_p8, 1, 0 }
  0x16   : > { %p2733_p9 = pneg %p3471_p8  ;;  %p2753_p10 = scmp.lt.s32.totalorder %s3368_s29, 3 }
  0x17   : > { %s3371_s15 = smov [#allocation9]   ;;  %s3155_s17 = scalar_lea.vmem %s241_s12, 64 }
  0x18   : > { %p3480_p11 = pnand %p2733_p9, %p3723_p3  ;;  %p3484_p12 = pnand %p2753_p10, %p55_p4 }
  0x19   : > { %s250_s16 = sshll.u32 %s3371_s15, 4  ;;  %p3156_p0 = scmp.ne.s32.totalorder %s241_s12, %s3155_s17  ;;  %s251_s16 = int_to_ptr.vmem [resolvable:$true] %s250_s16 }
  0x1a   : > { %p3146_p13 = pneg %p3480_p11  ;;  %p3163_p5 = scmp.lt.s32.totalorder %s241_s12, %s241_s12 }
  0x1b   : > { %p3164_p7 = scmp.lt.s32.totalorder %s3155_s17, %s3155_s17 }
  0x1c   : > { %p3158_p1 = pnand %p3156_p0, %p3146_p13 }
  0x1d   : > { %p3165_p9 = por %p3164_p7, %p3163_p5 }
  0x1e   : > { %p3159_p2 = pneg %p3158_p1 }
  0x20   : > { %p3166_p3 = pnand %p3165_p9, %p3159_p2 }
  0x22   : > { %3169 = shalt.err (!%p3166_p3)
}
  0x23   : > { %s3739_s2 = sld [smem:[#allocation22_spill]]  ;;  %s3181_s20 = scalar_lea.vmem %s251_s16, 16384 }
  0x24   : > { %p3182_p4 = scmp.ne.s32.totalorder %s251_s16, %s3181_s20  ;;  %p3189_p1 = scmp.lt.s32.totalorder %s251_s16, %s251_s16 }
  0x25   : > { %p3190_p6 = scmp.lt.s32.totalorder %s3181_s20, %s3181_s20 }
  0x26   : > { %p3184_p10 = pnand %p3182_p4, %p3146_p13 }
  0x27   : > { %p3191_p8 = por %p3190_p6, %p3189_p1 }
  0x28   : > { %p3185_p0 = pneg %p3184_p10 }
  0x29   : > { %2736 = dma.hbm_to_vmem [thread:$0]  (!%p3480_p11), %s3739_s2, 64, %s241_s12, [#allocation7]  }
  0x2a   : > { %p3192_p5 = pnand %p3191_p8, %p3185_p0 }
  0x2c   : > { %3195 = shalt.err (!%p3192_p5)
}
  0x2d   : > { %s3726_s21 = smov 256   ;;  %s3727_s22 = smov 16  }
  0x2e   : > { %s3740_s3 = sld [smem:[#allocation23_spill]]  ;;  %s3374_s11 = smov [#allocation11]  }
  0x2f   : > { %s266_s12 = sshll.u32 %s3374_s11, 4  ;;  %s267_s12 = int_to_ptr.vmem [resolvable:$true] %s266_s12 }
  0x30   : > { %s3207_s15 = scalar_lea.vmem %s267_s12, 4096  ;;  %p3215_p2 = scmp.lt.s32.totalorder %s267_s12, %s267_s12 }
  0x31   : > { %p3208_p3 = scmp.ne.s32.totalorder %s267_s12, %s3207_s15  ;;  %p3216_p7 = scmp.lt.s32.totalorder %s3207_s15, %s3207_s15 }
  0x33   : > { %p3210_p6 = pnand %p3208_p3, %p3146_p13  ;;  %p3217_p9 = por %p3216_p7, %p3215_p2 }
  0x34   : > { %2739 = dma.hbm_to_vmem [thread:$0]  (!%p3480_p11), %s3740_s3, 16384, %s251_s16, [#allocation10], %s3726_s21, %s3726_s21, %s3727_s22  }
  0x35   : > { %p3211_p8 = pneg %p3210_p6 }
  0x37   : > { %p3218_p4 = pnand %p3217_p9, %p3211_p8 }
  0x39   : > { %3221 = shalt.err (!%p3218_p4)
}
  0x3a   : > { %s3375_s17 = smov 64   ;;  %s3376_s16 = smov 4  }
  0x3b   : > { %s3741_s5 = sld [smem:[#allocation24_spill]]  ;;  %s3518_s20 = sand.u32 1, %s3356_s26  }
  0x3c   : > { %s34_s23 = sadd.s32 1, %s3364_s28  ;;  %s2420_s24 = sshll.u32 %s3518_s20, 4 }
  0x3d   : > { %p35_p13 = scmp.ge.s32.totalorder %s34_s23, 3  ;;  %s2666_s11 = sshll.u32 %s3364_s28, 7 }
  0x3e   : > { %s287_s15 = scalar_lea.vmem [#allocation3], %s2420_s24  ;;  %s3743_s0 = sld [smem:[#allocation21_spill]] }
  0x3f   : > { %s297_s21 = sshll.u32 %s287_s15, 4  ;;  %s3761_s23 = smov (%p35_p13, %s34_s23), 0  ;;  %s298_s21 = int_to_ptr.vmem [resolvable:$true] %s297_s21 }
  0x40   : > { %3742 = sst [smem:[#allocation19_spill]] %s3761_s23  ;;  %s284_s19 = scalar_lea.sflag [#allocation4], %s3518_s20 }
  0x41   : > { %2742 = dma.hbm_to_vmem [thread:$0]  (!%p3480_p11), %s3741_s5, 4096, %s267_s12, [#allocation10], %s3375_s17, %s3375_s17, %s3376_s16  }
  0x42   : > { %s42_s12 = ssub.s32 %s3364_s28, %s3761_s23  ;;  %s307_s17 = sand.u32 1, %s3368_s29  }
  0x43   : > { %p44_p11 = scmp.eq.s32.totalorder %s42_s12, 0  ;;  %p3224_p10 = pneg %p3484_p12 }
  0x44   : > { %s296_s18 = scalar_lea.hbm %s3743_s0, %s2666_s11  ;;  %s3235_s2 = scalar_lea.vmem %s298_s21, 256 }
  0x45   : > { %s3534_s16 = scalar_select %p44_p11, %s3356_s26, %s46_s8  }
  0x46   : > { %p3236_p0 = scmp.ne.s32.totalorder %s298_s21, %s3235_s2  ;;  %s3377_s24 = smov [#allocation3]  }
  0x47   : > { %3744 = sst [smem:[#allocation20_spill]] %s3534_s16  ;;  %s3240_s22 = sshll.u32 %s3377_s24, 4  ;;  %s3241_s22 = int_to_ptr.vmem [resolvable:$false] %s3240_s22 }
  0x48   : > { %p3238_p1 = pnand %p3236_p0, %p3224_p10  ;;  %s3242_s11 = scalar_lea.vmem %s3241_s22, 512 }
  0x49   : > { %p3243_p3 = scmp.lt.s32.totalorder %s298_s21, %s3241_s22  ;;  %p3244_p6 = scmp.lt.s32.totalorder %s3242_s11, %s3235_s2 }
  0x4a   : > { %p3239_p5 = pneg %p3238_p1 }
  0x4b   : > { %p3245_p8 = por %p3244_p6, %p3243_p3 }
  0x4d   : > { %p3246_p2 = pnand %p3245_p8, %p3239_p5 }
  0x4f   : > { %3249 = shalt.err (!%p3246_p2)
}
  0x50   : > { %s3378_s8 = smov 384   ;;  %s3379_s15 = smov 128  }
  0x51   : > { %s3380_s13 = smov 8   ;;  %s2423_s12 = sshll.u32 %s3518_s20, 9 }
  0x52   : > { %2746 = dma.hbm_to_vmem [thread:$0]  (!%p3484_p12), %s296_s18, 256, %s298_s21, %s284_s19, %s3378_s8, %s3379_s15, %s3380_s13  }
  0x53   : > { %s2668_s0 = sshll.u32 %s3364_s28, 13  ;;  %s311_s22 = scalar_lea.vmem [#allocation6], %s2423_s12 }
  0x54   : > { %s318_s5 = scalar_lea.hbm %s3716_s1, %s2668_s0  ;;  %s319_s2 = sshll.u32 %s311_s22, 4  ;;  %s320_s2 = int_to_ptr.vmem [resolvable:$true] %s319_s2 }
  0x55   : > { %s308_s11 = scalar_lea.sflag [#allocation7], %s307_s17  ;;  %s3263_s23 = scalar_lea.vmem %s320_s2, 8192 }
  0x56   : > { %p3264_p7 = scmp.ne.s32.totalorder %s320_s2, %s3263_s23  ;;  %s3381_s16 = smov [#allocation6]  }
  0x57   : > { %s3268_s26 = sshll.u32 %s3381_s16, 4  ;;  %s3269_s26 = int_to_ptr.vmem [resolvable:$false] %s3268_s26 }
  0x58   : > { %p3266_p9 = pnand %p3264_p7, %p3224_p10  ;;  %s3270_s21 = scalar_lea.vmem %s3269_s26, 16384 }
  0x59   : > { %p3271_p13 = scmp.lt.s32.totalorder %s320_s2, %s3269_s26  ;;  %p3272_p11 = scmp.lt.s32.totalorder %s3270_s21, %s3263_s23 }
  0x5a   : > { %p3267_p4 = pneg %p3266_p9 }
  0x5b   : > { %p3273_p0 = por %p3272_p11, %p3271_p13 }
  0x5d   : > { %p3274_p1 = pnand %p3273_p0, %p3267_p4 }
  0x5f   : > { %3277 = shalt.err (!%p3274_p1)
}
  0x60   : > { %s3745_s0 = smov 16   ;;  %s3746_s3 = smov 256  }
  0x61   : > { %2749 = dma.hbm_to_vmem [thread:$0]  (!%p3484_p12), %s318_s5, 8192, %s320_s2, %s308_s11, %s3746_s3, %s3746_s3, %s3745_s0  }
  0x62   : > { %p3747_p5 = scmp.ne.s32.totalorder %s3736_s10, 0 }
  0x63   : > { %s333_s20 = sand.u32 (!%p3747_p5), 1, %s3352_s25   ;;  %p3748_p10 = scmp.ne.s32.totalorder (!%p3747_p5), %s3735_s9, 0 }
  0x64   : > { %331 = sbr.rel (%p3747_p5) target bundleno = 952 (0x3b8), region = 48  ;;  %s2428_s18 = sshll.u32 (!%p3747_p5), %s333_s20, 4 }
  0x65   : > { %s334_s17 = scalar_lea.sflag (!%p3747_p5), [#allocation4], %s333_s20  ;;  %s3560_s16 = scalar_lea.vmem (!%p3747_p5), [#allocation3], %s2428_s18 }
  0x69   : > { %3327 = dma.done.wait (%p3748_p10), %s334_s17, 256  }
  0x6a   : > { %3329 = vsyncadd (%p3748_p10), %s334_s17, 4294967040  ;;  %s342_s26 = sand.u32 1, %s3455_s30   ;;  %s2429_s14 = sshll.u32 %s333_s20, 9 }
  0x6b   : > { %s343_s5 = scalar_lea.sflag [#allocation7], %s342_s26  ;;  %s3567_s23 = scalar_lea.vmem [#allocation6], %s2429_s14 }
  0x6c   : > { %3331 = dma.done.wait (%p3748_p10), %s343_s5, 8192  }
  0x6d   : > { %3333 = vsyncadd (%p3748_p10), %s343_s5, 4294959104  ;;  %p3749_p12 = scmp.eq.s32.totalorder %s3455_s30, 0 }
  0x6f   : > { %3335 = dma.done.wait (%p3749_p12), [#allocation7], 64   ;;  %p3750_p3 = pmov %p3749_p12 }
  0x71   : > { %3337 = vsyncadd (%p3750_p3), [#allocation7], 4294967232  ;;  %p3751_p6 = pmov %p3750_p3 }
  0x72   : > { %p3752_p8 = pmov %p3750_p3 }
  0x73   : > { %3339 = dma.done.wait (%p3751_p6), [#allocation10], 20480  }
  0x74   : > { %3341 = vsyncadd (%p3752_p8), [#allocation10], 4294946816  ;;  %p2433_p2 = scmp.ne.s32.totalorder %s3360_s27, 0 }
  0x76   : > { %397 = sbr.rel (%p2433_p2) target bundleno = 128 (0x80), region = 72 }
  0x7b   : > { %v3382_v0 = vmov 0.0  }
  0x7c   : > { %398 = vst [vmem:[#allocation2 + $0x30] sm:$0xff] %v3382_v0  ;;  %399 = vst [vmem:[#allocation2] sm:$0xff] %v3382_v0 }
  0x7d   : > { %400 = vst [vmem:[#allocation2 + $0x18] sm:$0xff] %v3382_v0  ;;  %401 = vst [vmem:[#allocation2 + $0x10] sm:$0xff] %v3382_v0 }
  0x7e   : > { %402 = vst [vmem:[#allocation2 + $0x8] sm:$0xff] %v3382_v0  ;;  %403 = vst [vmem:[#allocation2 + $0x20] sm:$0xff] %v3382_v0 }
  0x7f   : > { %404 = vst [vmem:[#allocation2 + $0x28] sm:$0xff] %v3382_v0  ;;  %405 = vst [vmem:[#allocation2 + $0x38] sm:$0xff] %v3382_v0 }
  0x80 PF: > { %v2821_v1 = vld [vmem:[%s3567_s23 + $0xe4] ss:$16 sps:$4 sm:$0xff]   ;;  %v2823_v2 = vld [vmem:[%s3567_s23 + $0xec] ss:$16 sps:$4 sm:$0xff]   ;;  %v2825_v3 = vld [vmem:[%s3567_s23 + $0xe0] ss:$16 sps:$4 sm:$0xff]  }
  0x81   : > { %810 = vmatprep.subr.bf16.mxu0 %v2821_v1  ;;  %v2826_v4 = vld [vmem:[%s3567_s23 + $0xe8] ss:$16 sps:$4 sm:$0xff]   ;;  %853 = vmatprep.subr.bf16.mxu1 %v2823_v2  ;;  %v2827_v5 = vld [vmem:[%s3567_s23 + $0xc4] ss:$16 sps:$4 sm:$0xff]   ;;  %v2829_v6 = vld [vmem:[%s3567_s23 + $0xcc] ss:$16 sps:$4 sm:$0xff]  }
  0x82   : > { %811 = vmatpush1.bf16.msra.mxu0 %v2825_v3  ;;  %854 = vmatpush1.bf16.msra.mxu1 %v2826_v4  ;;  %v2831_v7 = vld [vmem:[%s3567_s23 + $0xc0] ss:$16 sps:$4 sm:$0xff]   ;;  %v2832_v8 = vld [vmem:[%s3567_s23 + $0xc8] ss:$16 sps:$4 sm:$0xff]   ;;  %v2833_v9 = vld [vmem:[%s3567_s23 + $0xa4] ss:$16 sps:$4 sm:$0xff]  }
  0x83   : > { %812 = vmatprep.subr.bf16.mxu0 %v2827_v5  ;;  %855 = vmatprep.subr.bf16.mxu1 %v2829_v6  ;;  %v2835_v10 = vld [vmem:[%s3567_s23 + $0xac] ss:$16 sps:$4 sm:$0xff]   ;;  %v2837_v11 = vld [vmem:[%s3567_s23 + $0xa0] ss:$16 sps:$4 sm:$0xff]   ;;  %v2838_v12 = vld [vmem:[%s3567_s23 + $0xa8] ss:$16 sps:$4 sm:$0xff]  }
  0x84   : > { %v2839_v13 = vld [vmem:[%s3567_s23 + $0x84] ss:$16 sps:$4 sm:$0xff]   ;;  %v2841_v14 = vld [vmem:[%s3567_s23 + $0x8c] ss:$16 sps:$4 sm:$0xff]   ;;  %v2843_v15 = vld [vmem:[%s3567_s23 + $0x80] ss:$16 sps:$4 sm:$0xff]  }
  0x85   : > { %v2844_v16 = vld [vmem:[%s3567_s23 + $0x88] ss:$16 sps:$4 sm:$0xff]   ;;  %v2845_v17 = vld [vmem:[%s3567_s23 + $0x64] ss:$16 sps:$4 sm:$0xff]   ;;  %v2847_v18 = vld [vmem:[%s3567_s23 + $0x6c] ss:$16 sps:$4 sm:$0xff]  }
  0x86   : > { %813 = vmatpush1.bf16.msra.mxu0 %v2831_v7  ;;  %856 = vmatpush1.bf16.msra.mxu1 %v2832_v8  ;;  %v2849_v19 = vld [vmem:[%s3567_s23 + $0x60] ss:$16 sps:$4 sm:$0xff]   ;;  %v2850_v20 = vld [vmem:[%s3567_s23 + $0x68] ss:$16 sps:$4 sm:$0xff]   ;;  %v2851_v21 = vld [vmem:[%s3567_s23 + $0x44] ss:$16 sps:$4 sm:$0xff]  }
  0x87   : > { %814 = vmatprep.subr.bf16.mxu0 %v2833_v9  ;;  %857 = vmatprep.subr.bf16.mxu1 %v2835_v10  ;;  %v2853_v22 = vld [vmem:[%s3567_s23 + $0x4c] ss:$16 sps:$4 sm:$0xff]   ;;  %v2855_v23 = vld [vmem:[%s3567_s23 + $0x40] ss:$16 sps:$4 sm:$0xff]   ;;  %v2856_v24 = vld [vmem:[%s3567_s23 + $0x48] ss:$16 sps:$4 sm:$0xff]  }
  0x88   : > { %v2857_v25 = vld [vmem:[%s3567_s23 + $0x24] ss:$16 sps:$4 sm:$0xff]   ;;  %v2859_v26 = vld [vmem:[%s3567_s23 + $0x2c] ss:$16 sps:$4 sm:$0xff]   ;;  %v2861_v27 = vld [vmem:[%s3567_s23 + $0x20] ss:$16 sps:$4 sm:$0xff]  }
  0x89   : > { %v2862_v28 = vld [vmem:[%s3567_s23 + $0x28] ss:$16 sps:$4 sm:$0xff]   ;;  %v2863_v29 = vld [vmem:[%s3567_s23 + $0x4] ss:$16 sps:$4 sm:$0xff]   ;;  %v2865_v30 = vld [vmem:[%s3567_s23 + $0xc] ss:$16 sps:$4 sm:$0xff]  }
  0x8a   : > { %815 = vmatpush1.bf16.msra.mxu0 %v2837_v11  ;;  %858 = vmatpush1.bf16.msra.mxu1 %v2838_v12  ;;  %v2867_v31 = vld [vmem:[%s3567_s23] ss:$16 sps:$4 sm:$0xff]   ;;  %v2868_v32 = vld [vmem:[%s3567_s23 + $0x8] ss:$16 sps:$4 sm:$0xff]   ;;  %v2869_v33 = vld [vmem:[%s3567_s23 + $0x1e4] ss:$16 sps:$4 sm:$0xff]  }
  0x8b   : > { %816 = vmatprep.subr.bf16.mxu0 %v2839_v13  ;;  %859 = vmatprep.subr.bf16.mxu1 %v2841_v14  ;;  %v2871_v34 = vld [vmem:[%s3567_s23 + $0x1ec] ss:$16 sps:$4 sm:$0xff]   ;;  %v2873_v35 = vld [vmem:[%s3567_s23 + $0x1e0] ss:$16 sps:$4 sm:$0xff]   ;;  %v2874_v36 = vld [vmem:[%s3567_s23 + $0x1e8] ss:$16 sps:$4 sm:$0xff]  }
  0x8c   : > { %v2875_v37 = vld [vmem:[%s3567_s23 + $0x1c4] ss:$16 sps:$4 sm:$0xff]   ;;  %v2877_v38 = vld [vmem:[%s3567_s23 + $0x1cc] ss:$16 sps:$4 sm:$0xff]   ;;  %v2879_v39 = vld [vmem:[%s3567_s23 + $0x1c0] ss:$16 sps:$4 sm:$0xff]  }
  0x8d   : > { %v2880_v40 = vld [vmem:[%s3567_s23 + $0x1c8] ss:$16 sps:$4 sm:$0xff]   ;;  %v2881_v41 = vld [vmem:[%s3567_s23 + $0x1a4] ss:$16 sps:$4 sm:$0xff]   ;;  %v2883_v42 = vld [vmem:[%s3567_s23 + $0x1ac] ss:$16 sps:$4 sm:$0xff]  }
  0x8e   : > { %817 = vmatpush1.bf16.msra.mxu0 %v2843_v15  ;;  %860 = vmatpush1.bf16.msra.mxu1 %v2844_v16  ;;  %v2885_v43 = vld [vmem:[%s3567_s23 + $0x1a0] ss:$16 sps:$4 sm:$0xff]   ;;  %v2886_v44 = vld [vmem:[%s3567_s23 + $0x1a8] ss:$16 sps:$4 sm:$0xff]   ;;  %v2887_v45 = vld [vmem:[%s3567_s23 + $0x184] ss:$16 sps:$4 sm:$0xff]  }
  0x8f   : > { %818 = vmatprep.subr.bf16.mxu0 %v2845_v17  ;;  %861 = vmatprep.subr.bf16.mxu1 %v2847_v18  ;;  %v2889_v46 = vld [vmem:[%s3567_s23 + $0x18c] ss:$16 sps:$4 sm:$0xff]   ;;  %v2891_v48 = vld [vmem:[%s3567_s23 + $0x180] ss:$16 sps:$4 sm:$0xff]   ;;  %v2892_v49 = vld [vmem:[%s3567_s23 + $0x188] ss:$16 sps:$4 sm:$0xff]  }
  0x90   : > { %v2919_v47 = vld [vmem:[%s3560_s16 + $0x4] ss:$8 sps:$4 sm:$0xff]   ;;  %v2897_v52 = vld [vmem:[%s3567_s23 + $0x160] ss:$16 sps:$4 sm:$0xff]   ;;  %v2898_v53 = vld [vmem:[%s3567_s23 + $0x168] ss:$16 sps:$4 sm:$0xff]  }
  0x91   : > { %v2893_v50 = vld [vmem:[%s3567_s23 + $0x164] ss:$16 sps:$4 sm:$0xff]   ;;  %v2895_v51 = vld [vmem:[%s3567_s23 + $0x16c] ss:$16 sps:$4 sm:$0xff]   ;;  %842 = vmatprep.mubr.bf16.mxu0 %v2919_v47  ;;  %885 = vmatprep.mubr.bf16.mxu1 %v2919_v47  ;;  %v2903_v56 = vld [vmem:[%s3567_s23 + $0x140] ss:$16 sps:$4 sm:$0xff]  }
  0x92   : > { %819 = vmatpush1.bf16.msra.mxu0 %v2849_v19  ;;  %862 = vmatpush1.bf16.msra.mxu1 %v2850_v20  ;;  %v2899_v54 = vld [vmem:[%s3567_s23 + $0x144] ss:$16 sps:$4 sm:$0xff]   ;;  %v2901_v55 = vld [vmem:[%s3567_s23 + $0x14c] ss:$16 sps:$4 sm:$0xff]   ;;  %v2904_v57 = vld [vmem:[%s3567_s23 + $0x148] ss:$16 sps:$4 sm:$0xff]  }
  0x93   : > { %820 = vmatprep.subr.bf16.mxu0 %v2851_v21  ;;  %863 = vmatprep.subr.bf16.mxu1 %v2853_v22  ;;  %v2905_v58 = vld [vmem:[%s3567_s23 + $0x124] ss:$16 sps:$4 sm:$0xff]   ;;  %v2907_v59 = vld [vmem:[%s3567_s23 + $0x12c] ss:$16 sps:$4 sm:$0xff]   ;;  %v2909_v60 = vld [vmem:[%s3567_s23 + $0x120] ss:$16 sps:$4 sm:$0xff]  }
  0x94   : > { %v2910_v61 = vld [vmem:[%s3567_s23 + $0x128] ss:$16 sps:$4 sm:$0xff]   ;;  %v2911_v62 = vld [vmem:[%s3567_s23 + $0x104] ss:$16 sps:$4 sm:$0xff]   ;;  %v2913_v63 = vld [vmem:[%s3567_s23 + $0x10c] ss:$16 sps:$4 sm:$0xff]  }
  0x95   : > { %v2915_v0 = vld [vmem:[%s3567_s23 + $0x100] ss:$16 sps:$4 sm:$0xff]   ;;  %v2916_v1 = vld [vmem:[%s3567_s23 + $0x108] ss:$16 sps:$4 sm:$0xff]   ;;  %p2500_p7 = scmp.ne.s32.totalorder %s3360_s27, 2 }
  0x96   : > { %821 = vmatpush1.bf16.msra.mxu0 %v2855_v23  ;;  %864 = vmatpush1.bf16.msra.mxu1 %v2856_v24  ;;  %v2917_v2 = vld [vmem:[%s3560_s16] ss:$8 sps:$4 sm:$0xff]  }
  0x97   : > { %822 = vmatprep.subr.bf16.mxu0 %v2857_v25  ;;  %865 = vmatprep.subr.bf16.mxu1 %v2859_v26  ;;  %v406_v3 = vld [vmem:[#allocation2 + $0x30] sm:$0xff]  ;;  %v408_v4 = vld [vmem:[#allocation2 + $0x18] sm:$0xff]  ;;  %v407_v7 = vld [vmem:[#allocation2] sm:$0xff] }
  0x98   : > { %v409_v8 = vld [vmem:[#allocation2 + $0x10] sm:$0xff]  ;;  %v410_v13 = vld [vmem:[#allocation2 + $0x8] sm:$0xff]  ;;  %v411_v19 = vld [vmem:[#allocation2 + $0x20] sm:$0xff] }
  0x99   : > { %v412_v14 = vld [vmem:[#allocation2 + $0x28] sm:$0xff]  ;;  %v413_v20 = vld [vmem:[#allocation2 + $0x38] sm:$0xff] }
  0x9a   : > { %823 = vmatpush1.bf16.msra.mxu0 %v2861_v27  ;;  %866 = vmatpush1.bf16.msra.mxu1 %v2862_v28 }
  0x9b   : > { %824 = vmatprep.subr.bf16.mxu0 %v2863_v29  ;;  %867 = vmatprep.subr.bf16.mxu1 %v2865_v30 }
  0x9e   : > { %825 = vmatpush1.bf16.msra.mxu0 %v2867_v31  ;;  %868 = vmatpush1.bf16.msra.mxu1 %v2868_v32 }
  0x9f   : > { %826 = vmatprep.subr.bf16.mxu0 %v2869_v33  ;;  %869 = vmatprep.subr.bf16.mxu1 %v2871_v34 }
  0xa2   : > { %827 = vmatpush2.bf16.msra.mxu0 %v2873_v35  ;;  %870 = vmatpush2.bf16.msra.mxu1 %v2874_v36 }
  0xa3   : > { %828 = vmatprep.subr.bf16.mxu0 %v2875_v37  ;;  %871 = vmatprep.subr.bf16.mxu1 %v2877_v38 }
  0xa6   : > { %829 = vmatpush2.bf16.msra.mxu0 %v2879_v39  ;;  %872 = vmatpush2.bf16.msra.mxu1 %v2880_v40 }
  0xa7   : > { %830 = vmatprep.subr.bf16.mxu0 %v2881_v41  ;;  %873 = vmatprep.subr.bf16.mxu1 %v2883_v42 }
  0xaa   : > { %831 = vmatpush2.bf16.msra.mxu0 %v2885_v43  ;;  %874 = vmatpush2.bf16.msra.mxu1 %v2886_v44 }
  0xab   : > { %832 = vmatprep.subr.bf16.mxu0 %v2887_v45  ;;  %875 = vmatprep.subr.bf16.mxu1 %v2889_v46 }
  0xae   : > { %833 = vmatpush2.bf16.msra.mxu0 %v2891_v48  ;;  %876 = vmatpush2.bf16.msra.mxu1 %v2892_v49 }
  0xaf   : > { %834 = vmatprep.subr.bf16.mxu0 %v2893_v50  ;;  %877 = vmatprep.subr.bf16.mxu1 %v2895_v51 }
  0xb2   : > { %835 = vmatpush2.bf16.msra.mxu0 %v2897_v52  ;;  %878 = vmatpush2.bf16.msra.mxu1 %v2898_v53 }
  0xb3   : > { %836 = vmatprep.subr.bf16.mxu0 %v2899_v54  ;;  %879 = vmatprep.subr.bf16.mxu1 %v2901_v55 }
  0xb6   : > { %837 = vmatpush2.bf16.msra.mxu0 %v2903_v56  ;;  %880 = vmatpush2.bf16.msra.mxu1 %v2904_v57 }
  0xb7   : > { %838 = vmatprep.subr.bf16.mxu0 %v2905_v58  ;;  %881 = vmatprep.subr.bf16.mxu1 %v2907_v59 }
  0xba   : > { %839 = vmatpush2.bf16.msra.mxu0 %v2909_v60  ;;  %882 = vmatpush2.bf16.msra.mxu1 %v2910_v61 }
  0xbb   : > { %840 = vmatprep.subr.bf16.mxu0 %v2911_v62  ;;  %883 = vmatprep.subr.bf16.mxu1 %v2913_v63 }
  0xbe   : > { %841 = vmatpush2.bf16.msra.mxu0 %v2915_v0  ;;  %884 = vmatpush2.bf16.msra.mxu1 %v2916_v1 }
  0xc1   : > { %843 = vmatmul.mubr.bf16.vlgmr.msra.gmra.mxu0 %v2917_v2  ;;  %886 = vmatmul.mubr.bf16.vlgmr.msra.gmra.mxu1 %v2917_v2 }
 0x181   : > { %v844_v5 = vpop.f32.mrf.mxu0  ;;  %v887_v6 = vpop.f32.mrf.mxu1 }
 0x182   : > { %v896_v9 = vadd.f32 %v844_v5, %v406_v3  ;;  %v898_v10 = vadd.f32 %v887_v6, %v408_v4 }
 0x183   : > { %v846_v11 = vpop.f32.mrf.mxu0  ;;  %v889_v12 = vpop.f32.mrf.mxu1 }
 0x184   : > { %904 = vst [vmem:[#allocation2 + $0x30] sm:$0xff] %v896_v9  ;;  %906 = vst [vmem:[#allocation2 + $0x18] sm:$0xff] %v898_v10  ;;  %v897_v15 = vadd.f32 %v846_v11, %v407_v7  ;;  %v899_v16 = vadd.f32 %v889_v12, %v409_v8 }
 0x185   : > { %v848_v17 = vpop.f32.mrf.mxu0  ;;  %v891_v18 = vpop.f32.mrf.mxu1 }
 0x186   : > { %905 = vst [vmem:[#allocation2] sm:$0xff] %v897_v15  ;;  %907 = vst [vmem:[#allocation2 + $0x10] sm:$0xff] %v899_v16  ;;  %v900_v21 = vadd.f32 %v848_v17, %v410_v13  ;;  %v902_v22 = vadd.f32 %v891_v18, %v412_v14  ;;  %915 = sbr.rel (%p2500_p7) target bundleno = 936 (0x3a8), region = 76 }
 0x187   : > { %v850_v23 = vpop.f32.mrf.mxu0  ;;  %v893_v24 = vpop.f32.mrf.mxu1 }
 0x188   : > { %908 = vst [vmem:[#allocation2 + $0x8] sm:$0xff] %v900_v21  ;;  %910 = vst [vmem:[#allocation2 + $0x28] sm:$0xff] %v902_v22  ;;  %v901_v25 = vadd.f32 %v850_v23, %v411_v19  ;;  %v903_v26 = vadd.f32 %v893_v24, %v413_v20 }
 0x18a   : > { %909 = vst [vmem:[#allocation2 + $0x20] sm:$0xff] %v901_v25  ;;  %911 = vst [vmem:[#allocation2 + $0x38] sm:$0xff] %v903_v26 }
 0x18b   : > { %v2920_v27 = vld [vmem:[#allocation9 + $0xe4] ss:$16 sps:$4 sm:$0xff]   ;;  %v2924_v29 = vld [vmem:[#allocation9 + $0xe0] ss:$16 sps:$4 sm:$0xff]   ;;  %v926_v0 = vlaneseq  ;;  %v924_v15 = vld [vmem:[#allocation8] sm:$0xf] }
 0x18c   : > { %v2922_v28 = vld [vmem:[#allocation9 + $0x2e4] ss:$16 sps:$4 sm:$0xff]   ;;  %1756 = vmatprep.subr.bf16.mxu0 %v2920_v27  ;;  %v2925_v30 = vld [vmem:[#allocation9 + $0x2e0] ss:$16 sps:$4 sm:$0xff]  }
 0x18d   : > { %1799 = vmatprep.subr.bf16.mxu1 %v2922_v28  ;;  %v2926_v31 = vld [vmem:[#allocation9 + $0xc4] ss:$16 sps:$4 sm:$0xff]   ;;  %1757 = vmatpush1.bf16.msra.mxu0 %v2924_v29  ;;  %v2930_v33 = vld [vmem:[#allocation9 + $0xc0] ss:$16 sps:$4 sm:$0xff]   ;;  %v3649_v5 = vshrl.u32 %v926_v0, 7 }
 0x18e   : > { %1800 = vmatpush1.bf16.msra.mxu1 %v2925_v30  ;;  %v2928_v32 = vld [vmem:[#allocation9 + $0x2c4] ss:$16 sps:$4 sm:$0xff]   ;;  %1758 = vmatprep.subr.bf16.mxu0 %v2926_v31  ;;  %v2931_v34 = vld [vmem:[#allocation9 + $0x2c0] ss:$16 sps:$4 sm:$0xff]   ;;  %v3018_v0 = vld [vmem:[#allocation9 + $0xec] ss:$16 sps:$4 sm:$0xff]  }
 0x18f   : > { %1801 = vmatprep.subr.bf16.mxu1 %v2928_v32  ;;  %v2932_v35 = vld [vmem:[#allocation9 + $0xa4] ss:$16 sps:$4 sm:$0xff]   ;;  %v2936_v37 = vld [vmem:[#allocation9 + $0xa0] ss:$16 sps:$4 sm:$0xff]   ;;  %v932_v10 = vsub.s32 1, %v3649_v5  ;;  %v940_v11 = vsub.s32 3, %v3649_v5 }
 0x190   : > { %v2934_v36 = vld [vmem:[#allocation9 + $0x2a4] ss:$16 sps:$4 sm:$0xff]   ;;  %v2937_v38 = vld [vmem:[#allocation9 + $0x2a0] ss:$16 sps:$4 sm:$0xff]   ;;  %v928_v30 = vsub.s32 0, %v3649_v5  ;;  %v936_v31 = vsub.s32 2, %v3649_v5 }
 0x191   : > { %1759 = vmatpush1.bf16.msra.mxu0 %v2930_v33  ;;  %v2938_v39 = vld [vmem:[#allocation9 + $0x84] ss:$16 sps:$4 sm:$0xff]   ;;  %v2942_v41 = vld [vmem:[#allocation9 + $0x80] ss:$16 sps:$4 sm:$0xff]   ;;  %v933_v19 = vrot.slane %v924_v15, %v932_v10  ;;  %v941_v21 = vrot.slane %v924_v15, %v940_v11 }
 0x192   : > { %1802 = vmatpush1.bf16.msra.mxu1 %v2931_v34  ;;  %1760 = vmatprep.subr.bf16.mxu0 %v2932_v35  ;;  %v2940_v40 = vld [vmem:[#allocation9 + $0x284] ss:$16 sps:$4 sm:$0xff]   ;;  %v2943_v42 = vld [vmem:[#allocation9 + $0x280] ss:$16 sps:$4 sm:$0xff]  }
 0x193   : > { %1803 = vmatprep.subr.bf16.mxu1 %v2934_v36  ;;  %v2944_v43 = vld [vmem:[#allocation9 + $0x64] ss:$16 sps:$4 sm:$0xff]   ;;  %v2948_v45 = vld [vmem:[#allocation9 + $0x60] ss:$16 sps:$4 sm:$0xff]  }
 0x194   : > { %v2946_v44 = vld [vmem:[#allocation9 + $0x264] ss:$16 sps:$4 sm:$0xff]   ;;  %v2949_v46 = vld [vmem:[#allocation9 + $0x260] ss:$16 sps:$4 sm:$0xff]  }
 0x195   : > { %1761 = vmatpush1.bf16.msra.mxu0 %v2936_v37  ;;  %v2950_v47 = vld [vmem:[#allocation9 + $0x44] ss:$16 sps:$4 sm:$0xff]   ;;  %v2954_v49 = vld [vmem:[#allocation9 + $0x40] ss:$16 sps:$4 sm:$0xff]  }
 0x196   : > { %1804 = vmatpush1.bf16.msra.mxu1 %v2937_v38  ;;  %1762 = vmatprep.subr.bf16.mxu0 %v2938_v39  ;;  %v2952_v48 = vld [vmem:[#allocation9 + $0x244] ss:$16 sps:$4 sm:$0xff]   ;;  %v2955_v50 = vld [vmem:[#allocation9 + $0x240] ss:$16 sps:$4 sm:$0xff]  }
 0x197   : > { %1805 = vmatprep.subr.bf16.mxu1 %v2940_v40  ;;  %v2956_v51 = vld [vmem:[#allocation9 + $0x24] ss:$16 sps:$4 sm:$0xff]   ;;  %v2960_v53 = vld [vmem:[#allocation9 + $0x20] ss:$16 sps:$4 sm:$0xff]  }
 0x198   : > { %v2958_v52 = vld [vmem:[#allocation9 + $0x224] ss:$16 sps:$4 sm:$0xff]   ;;  %v2961_v54 = vld [vmem:[#allocation9 + $0x220] ss:$16 sps:$4 sm:$0xff]  }
 0x199   : > { %1763 = vmatpush1.bf16.msra.mxu0 %v2942_v41  ;;  %v2962_v55 = vld [vmem:[#allocation9 + $0x4] ss:$16 sps:$4 sm:$0xff]   ;;  %v2966_v57 = vld [vmem:[#allocation9] ss:$16 sps:$4 sm:$0xff]  }
 0x19a   : > { %1806 = vmatpush1.bf16.msra.mxu1 %v2943_v42  ;;  %1764 = vmatprep.subr.bf16.mxu0 %v2944_v43  ;;  %v2964_v56 = vld [vmem:[#allocation9 + $0x204] ss:$16 sps:$4 sm:$0xff]   ;;  %v2967_v58 = vld [vmem:[#allocation9 + $0x200] ss:$16 sps:$4 sm:$0xff]  }
 0x19b   : > { %1807 = vmatprep.subr.bf16.mxu1 %v2946_v44  ;;  %v2968_v59 = vld [vmem:[#allocation9 + $0x1e4] ss:$16 sps:$4 sm:$0xff]   ;;  %v2972_v61 = vld [vmem:[#allocation9 + $0x1e0] ss:$16 sps:$4 sm:$0xff]  }
 0x19c   : > { %v2970_v60 = vld [vmem:[#allocation9 + $0x3e4] ss:$16 sps:$4 sm:$0xff]   ;;  %v2973_v62 = vld [vmem:[#allocation9 + $0x3e0] ss:$16 sps:$4 sm:$0xff]  }
 0x19d   : > { %1765 = vmatpush1.bf16.msra.mxu0 %v2948_v45  ;;  %v2974_v63 = vld [vmem:[#allocation9 + $0x1c4] ss:$16 sps:$4 sm:$0xff]   ;;  %v2978_v2 = vld [vmem:[#allocation9 + $0x1c0] ss:$16 sps:$4 sm:$0xff]   ;;  %v929_v45 = vrot.slane %v924_v15, %v928_v30 }
 0x19e   : > { %1808 = vmatpush1.bf16.msra.mxu1 %v2949_v46  ;;  %1766 = vmatprep.subr.bf16.mxu0 %v2950_v47  ;;  %v2976_v1 = vld [vmem:[#allocation9 + $0x3c4] ss:$16 sps:$4 sm:$0xff]   ;;  %v2979_v3 = vld [vmem:[#allocation9 + $0x3c0] ss:$16 sps:$4 sm:$0xff]   ;;  %v937_v47 = vrot.slane %v924_v15, %v936_v31  ;;  %v3028_v15 = vld [vmem:[#allocation9 + $0xa8] ss:$16 sps:$4 sm:$0xff]  }
 0x19f   : > { %1809 = vmatprep.subr.bf16.mxu1 %v2952_v48  ;;  %v2980_v4 = vld [vmem:[#allocation9 + $0x1a4] ss:$16 sps:$4 sm:$0xff]   ;;  %v2984_v7 = vld [vmem:[#allocation9 + $0x1a0] ss:$16 sps:$4 sm:$0xff]  }
 0x1a0   : > { %v2982_v6 = vld [vmem:[#allocation9 + $0x3a4] ss:$16 sps:$4 sm:$0xff]   ;;  %v2985_v8 = vld [vmem:[#allocation9 + $0x3a0] ss:$16 sps:$4 sm:$0xff]  }
 0x1a1   : > { %1767 = vmatpush1.bf16.msra.mxu0 %v2954_v49  ;;  %v2986_v9 = vld [vmem:[#allocation9 + $0x184] ss:$16 sps:$4 sm:$0xff]   ;;  %v917_v13 = vld [vmem:[#allocation2] sm:$0xff]  ;;  %v919_v16 = vld [vmem:[#allocation2 + $0x10] sm:$0xff] }
 0x1a2   : > { %1810 = vmatpush1.bf16.msra.mxu1 %v2955_v50  ;;  %1768 = vmatprep.subr.bf16.mxu0 %v2956_v51  ;;  %v2988_v12 = vld [vmem:[#allocation9 + $0x384] ss:$16 sps:$4 sm:$0xff]   ;;  %v921_v14 = vld [vmem:[#allocation2 + $0x20] sm:$0xff]  ;;  %v947_v25 = vadd.f32 %v933_v19, %v917_v13  ;;  %v949_v27 = vadd.f32 %v941_v21, %v919_v16  ;;  %v916_v42 = vld [vmem:[#allocation2 + $0x30] sm:$0xff] }
 0x1a3   : > { %1811 = vmatprep.subr.bf16.mxu1 %v2958_v52  ;;  %v2990_v17 = vld [vmem:[#allocation9 + $0x180] ss:$16 sps:$4 sm:$0xff]   ;;  %v923_v20 = vld [vmem:[#allocation2 + $0x38] sm:$0xff]  ;;  %v951_v26 = vadd.f32 %v933_v19, %v921_v14  ;;  %v920_v44 = vld [vmem:[#allocation2 + $0x8] sm:$0xff]  ;;  %v946_v52 = vadd.f32 %v929_v45, %v916_v42 }
 0x1a4   : > { %v2991_v18 = vld [vmem:[#allocation9 + $0x380] ss:$16 sps:$4 sm:$0xff]   ;;  %v2992_v22 = vld [vmem:[#allocation9 + $0x164] ss:$16 sps:$4 sm:$0xff]   ;;  %v953_v28 = vadd.f32 %v941_v21, %v923_v20  ;;  %v955_v33 = vmax.f32 %v947_v25, 0.0  ;;  %v957_v35 = vmax.f32 %v949_v27, 0.0 }
 0x1a5   : > { %1769 = vmatpush1.bf16.msra.mxu0 %v2960_v53  ;;  %v2994_v23 = vld [vmem:[#allocation9 + $0x364] ss:$16 sps:$4 sm:$0xff]   ;;  %v2996_v24 = vld [vmem:[#allocation9 + $0x160] ss:$16 sps:$4 sm:$0xff]   ;;  %v959_v34 = vmax.f32 %v951_v26, 0.0  ;;  %v950_v53 = vadd.f32 %v929_v45, %v920_v44 }
 0x1a6   : > { %1812 = vmatpush1.bf16.msra.mxu1 %v2961_v54  ;;  %1770 = vmatprep.subr.bf16.mxu0 %v2962_v55  ;;  %v2997_v29 = vld [vmem:[#allocation9 + $0x360] ss:$16 sps:$4 sm:$0xff]   ;;  %v2998_v32 = vld [vmem:[#allocation9 + $0x144] ss:$16 sps:$4 sm:$0xff]   ;;  %v961_v36 = vmax.f32 %v953_v28, 0.0 }
 0x1a7   : > { %1813 = vmatprep.subr.bf16.mxu1 %v2964_v56  ;;  %v3000_v37 = vld [vmem:[#allocation9 + $0x344] ss:$16 sps:$4 sm:$0xff]   ;;  %v3002_v38 = vld [vmem:[#allocation9 + $0x140] ss:$16 sps:$4 sm:$0xff]   ;;  %v963_v40 = vpack.c.bf16 %v959_v34, %v955_v33  ;;  %v3030_v13 = vld [vmem:[#allocation9 + $0xac] ss:$16 sps:$4 sm:$0xff]  }
 0x1a8   : > { %v3003_v39 = vld [vmem:[#allocation9 + $0x340] ss:$16 sps:$4 sm:$0xff]   ;;  %v965_v41 = vpack.c.bf16 %v961_v36, %v957_v35  ;;  %v3004_v43 = vld [vmem:[#allocation9 + $0x124] ss:$16 sps:$4 sm:$0xff]   ;;  %v3033_v14 = vld [vmem:[#allocation9 + $0x2ac] ss:$16 sps:$4 sm:$0xff]  }
 0x1a9   : > { %1771 = vmatpush1.bf16.msra.mxu0 %v2966_v57  ;;  %v918_v46 = vld [vmem:[#allocation2 + $0x18] sm:$0xff]  ;;  %v922_v48 = vld [vmem:[#allocation2 + $0x28] sm:$0xff]  ;;  %1788 = vmatprep.mubr.bf16.mxu0 %v963_v40  ;;  %v3008_v50 = vld [vmem:[#allocation9 + $0x120] ss:$16 sps:$4 sm:$0xff]  }
 0x1aa   : > { %1814 = vmatpush1.bf16.msra.mxu1 %v2967_v58  ;;  %1772 = vmatprep.subr.bf16.mxu0 %v2968_v59  ;;  %v3006_v49 = vld [vmem:[#allocation9 + $0x324] ss:$16 sps:$4 sm:$0xff]   ;;  %v3009_v51 = vld [vmem:[#allocation9 + $0x320] ss:$16 sps:$4 sm:$0xff]   ;;  %v948_v54 = vadd.f32 %v937_v47, %v918_v46  ;;  %v952_v55 = vadd.f32 %v937_v47, %v922_v48  ;;  %v3031_v16 = vld [vmem:[#allocation9 + $0x2a8] ss:$16 sps:$4 sm:$0xff]  }
 0x1ab   : > { %1815 = vmatprep.subr.bf16.mxu1 %v2970_v60  ;;  %1831 = vmatprep.mubr.bf16.mxu1 %v965_v41  ;;  %v3010_v56 = vld [vmem:[#allocation9 + $0x104] ss:$16 sps:$4 sm:$0xff]   ;;  %v3014_v58 = vld [vmem:[#allocation9 + $0x100] ss:$16 sps:$4 sm:$0xff]   ;;  %v954_v60 = vmax.f32 %v946_v52, 0.0 }
 0x1ac   : > { %v3012_v57 = vld [vmem:[#allocation9 + $0x304] ss:$16 sps:$4 sm:$0xff]   ;;  %v3015_v59 = vld [vmem:[#allocation9 + $0x300] ss:$16 sps:$4 sm:$0xff]   ;;  %v3034_v19 = vld [vmem:[#allocation9 + $0x88] ss:$16 sps:$4 sm:$0xff]  }
 0x1ad   : > { %1773 = vmatpush2.bf16.msra.mxu0 %v2972_v61  ;;  %v958_v61 = vmax.f32 %v950_v53, 0.0  ;;  %v3037_v20 = vld [vmem:[#allocation9 + $0x288] ss:$16 sps:$4 sm:$0xff]   ;;  %v3042_v21 = vld [vmem:[#allocation9 + $0x6c] ss:$16 sps:$4 sm:$0xff]  }
 0x1ae   : > { %1816 = vmatpush2.bf16.msra.mxu1 %v2973_v62  ;;  %1774 = vmatprep.subr.bf16.mxu0 %v2974_v63  ;;  %v956_v62 = vmax.f32 %v948_v54, 0.0  ;;  %v960_v63 = vmax.f32 %v952_v55, 0.0  ;;  %v3048_v25 = vld [vmem:[#allocation9 + $0x4c] ss:$16 sps:$4 sm:$0xff]   ;;  %v3046_v27 = vld [vmem:[#allocation9 + $0x48] ss:$16 sps:$4 sm:$0xff]  }
 0x1af   : > { %1817 = vmatprep.subr.bf16.mxu1 %v2976_v1  ;;  %v3021_v1 = vld [vmem:[#allocation9 + $0x2ec] ss:$16 sps:$4 sm:$0xff]   ;;  %v3049_v28 = vld [vmem:[#allocation9 + $0x248] ss:$16 sps:$4 sm:$0xff]  }
 0x1b0   : > { %v3051_v26 = vld [vmem:[#allocation9 + $0x24c] ss:$16 sps:$4 sm:$0xff]   ;;  %v3052_v33 = vld [vmem:[#allocation9 + $0x28] ss:$16 sps:$4 sm:$0xff]  }
 0x1b1   : > { %1775 = vmatpush2.bf16.msra.mxu0 %v2978_v2  ;;  %v3663_v2 = vpack.c.bf16 %v958_v61, %v954_v60  ;;  %v3055_v34 = vld [vmem:[#allocation9 + $0x228] ss:$16 sps:$4 sm:$0xff]   ;;  %v3060_v35 = vld [vmem:[#allocation9 + $0xc] ss:$16 sps:$4 sm:$0xff]  }
 0x1b2   : > { %1818 = vmatpush2.bf16.msra.mxu1 %v2979_v3  ;;  %1776 = vmatprep.subr.bf16.mxu0 %v2980_v4  ;;  %v3665_v3 = vpack.c.bf16 %v960_v63, %v956_v62  ;;  %v3016_v4 = vld [vmem:[#allocation9 + $0xe8] ss:$16 sps:$4 sm:$0xff]   ;;  %v3063_v36 = vld [vmem:[#allocation9 + $0x20c] ss:$16 sps:$4 sm:$0xff]  }
 0x1b3   : > { %1819 = vmatprep.subr.bf16.mxu1 %v2982_v6  ;;  %v3019_v6 = vld [vmem:[#allocation9 + $0x2e8] ss:$16 sps:$4 sm:$0xff]   ;;  %v3075_v44 = vld [vmem:[#allocation9 + $0x3cc] ss:$16 sps:$4 sm:$0xff]  }
 0x1b4   : > { %v3067_v42 = vld [vmem:[#allocation9 + $0x3e8] ss:$16 sps:$4 sm:$0xff]   ;;  %v3078_v47 = vld [vmem:[#allocation9 + $0x1ac] ss:$16 sps:$4 sm:$0xff]  }
 0x1b5   : > { %1777 = vmatpush2.bf16.msra.mxu0 %v2984_v7  ;;  %v3024_v7 = vld [vmem:[#allocation9 + $0xcc] ss:$16 sps:$4 sm:$0xff]   ;;  %v3070_v45 = vld [vmem:[#allocation9 + $0x1c8] ss:$16 sps:$4 sm:$0xff]  }
 0x1b6   : > { %1820 = vmatpush2.bf16.msra.mxu1 %v2985_v8  ;;  %1778 = vmatprep.subr.bf16.mxu0 %v2986_v9  ;;  %v3027_v8 = vld [vmem:[#allocation9 + $0x2cc] ss:$16 sps:$4 sm:$0xff]   ;;  %v3022_v9 = vld [vmem:[#allocation9 + $0xc8] ss:$16 sps:$4 sm:$0xff]  }
 0x1b7   : > { %1821 = vmatprep.subr.bf16.mxu1 %v2988_v12  ;;  %v3025_v12 = vld [vmem:[#allocation9 + $0x2c8] ss:$16 sps:$4 sm:$0xff]   ;;  %v3081_v48 = vld [vmem:[#allocation9 + $0x3ac] ss:$16 sps:$4 sm:$0xff]  }
 0x1b8   : > { %v3073_v46 = vld [vmem:[#allocation9 + $0x3c8] ss:$16 sps:$4 sm:$0xff]   ;;  %v3087_v52 = vld [vmem:[#allocation9 + $0x38c] ss:$16 sps:$4 sm:$0xff]  }
 0x1b9   : > { %1779 = vmatpush2.bf16.msra.mxu0 %v2990_v17  ;;  %v3036_v17 = vld [vmem:[#allocation9 + $0x8c] ss:$16 sps:$4 sm:$0xff]   ;;  %v3082_v53 = vld [vmem:[#allocation9 + $0x188] ss:$16 sps:$4 sm:$0xff]  }
 0x1ba   : > { %1822 = vmatpush2.bf16.msra.mxu1 %v2991_v18  ;;  %1780 = vmatprep.subr.bf16.mxu0 %v2992_v22  ;;  %v3039_v18 = vld [vmem:[#allocation9 + $0x28c] ss:$16 sps:$4 sm:$0xff]   ;;  %v3085_v54 = vld [vmem:[#allocation9 + $0x388] ss:$16 sps:$4 sm:$0xff]  }
 0x1bb   : > { %1823 = vmatprep.subr.bf16.mxu1 %v2994_v23  ;;  %v3045_v22 = vld [vmem:[#allocation9 + $0x26c] ss:$16 sps:$4 sm:$0xff]   ;;  %v3040_v23 = vld [vmem:[#allocation9 + $0x68] ss:$16 sps:$4 sm:$0xff]  }
 0x1bc   : > { %v3090_v55 = vld [vmem:[#allocation9 + $0x16c] ss:$16 sps:$4 sm:$0xff]   ;;  %v3094_v61 = vld [vmem:[#allocation9 + $0x148] ss:$16 sps:$4 sm:$0xff]  }
 0x1bd   : > { %1781 = vmatpush2.bf16.msra.mxu0 %v2996_v24  ;;  %v3043_v24 = vld [vmem:[#allocation9 + $0x268] ss:$16 sps:$4 sm:$0xff]   ;;  %v3099_v60 = vld [vmem:[#allocation9 + $0x34c] ss:$16 sps:$4 sm:$0xff]  }
 0x1be   : > { %1824 = vmatpush2.bf16.msra.mxu1 %v2997_v29  ;;  %1782 = vmatprep.subr.bf16.mxu0 %v2998_v32  ;;  %v3054_v29 = vld [vmem:[#allocation9 + $0x2c] ss:$16 sps:$4 sm:$0xff]   ;;  %v3097_v62 = vld [vmem:[#allocation9 + $0x348] ss:$16 sps:$4 sm:$0xff]  }
 0x1bf   : > { %1825 = vmatprep.subr.bf16.mxu1 %v3000_v37  ;;  %v3057_v32 = vld [vmem:[#allocation9 + $0x22c] ss:$16 sps:$4 sm:$0xff]   ;;  %v3058_v37 = vld [vmem:[#allocation9 + $0x8] ss:$16 sps:$4 sm:$0xff]  }
 0x1c0   : > { %v3102_v63 = vld [vmem:[#allocation9 + $0x12c] ss:$16 sps:$4 sm:$0xff]  }
 0x1c1   : > { %1783 = vmatpush2.bf16.msra.mxu0 %v3002_v38  ;;  %v3061_v38 = vld [vmem:[#allocation9 + $0x208] ss:$16 sps:$4 sm:$0xff]  }
 0x1c2   : > { %1826 = vmatpush2.bf16.msra.mxu1 %v3003_v39  ;;  %1784 = vmatprep.subr.bf16.mxu0 %v3004_v43  ;;  %v3066_v39 = vld [vmem:[#allocation9 + $0x1ec] ss:$16 sps:$4 sm:$0xff]  }
 0x1c3   : > { %1827 = vmatprep.subr.bf16.mxu1 %v3006_v49  ;;  %v3072_v43 = vld [vmem:[#allocation9 + $0x1cc] ss:$16 sps:$4 sm:$0xff]   ;;  %v3076_v49 = vld [vmem:[#allocation9 + $0x1a8] ss:$16 sps:$4 sm:$0xff]  }
 0x1c5   : > { %1785 = vmatpush2.bf16.msra.mxu0 %v3008_v50  ;;  %v3079_v50 = vld [vmem:[#allocation9 + $0x3a8] ss:$16 sps:$4 sm:$0xff]  }
 0x1c6   : > { %1828 = vmatpush2.bf16.msra.mxu1 %v3009_v51  ;;  %1786 = vmatprep.subr.bf16.mxu0 %v3010_v56  ;;  %v3084_v51 = vld [vmem:[#allocation9 + $0x18c] ss:$16 sps:$4 sm:$0xff]  }
 0x1c7   : > { %1829 = vmatprep.subr.bf16.mxu1 %v3012_v57  ;;  %v3093_v56 = vld [vmem:[#allocation9 + $0x36c] ss:$16 sps:$4 sm:$0xff]   ;;  %v3088_v57 = vld [vmem:[#allocation9 + $0x168] ss:$16 sps:$4 sm:$0xff]  }
 0x1c9   : > { %1787 = vmatpush2.bf16.msra.mxu0 %v3014_v58  ;;  %v3091_v58 = vld [vmem:[#allocation9 + $0x368] ss:$16 sps:$4 sm:$0xff]  }
 0x1ca   : > { %1830 = vmatpush2.bf16.msra.mxu1 %v3015_v59  ;;  %1842 = vmatprep.subr.bf16.mxu0 %v3018_v0  ;;  %v3096_v59 = vld [vmem:[#allocation9 + $0x14c] ss:$16 sps:$4 sm:$0xff]  }
 0x1cb   : > { %1885 = vmatprep.subr.bf16.mxu1 %v3021_v1  ;;  %v3105_v0 = vld [vmem:[#allocation9 + $0x32c] ss:$16 sps:$4 sm:$0xff]   ;;  %v3100_v1 = vld [vmem:[#allocation9 + $0x128] ss:$16 sps:$4 sm:$0xff]  }
 0x1cc   : > { %1789 = vmatmul.mubr.bf16.vlgmr.msra.gmra.mxu0 %v3663_v2 }
 0x1cd   : > { %1832 = vmatmul.mubr.bf16.vlgmr.msra.gmra.mxu1 %v3665_v3  ;;  %1843 = vmatpush1.bf16.msra.mxu0 %v3016_v4  ;;  %v3103_v4 = vld [vmem:[#allocation9 + $0x328] ss:$16 sps:$4 sm:$0xff]  }
 0x1ce   : > { %1886 = vmatpush1.bf16.msra.mxu1 %v3019_v6  ;;  %1844 = vmatprep.subr.bf16.mxu0 %v3024_v7  ;;  %v3108_v6 = vld [vmem:[#allocation9 + $0x10c] ss:$16 sps:$4 sm:$0xff]  }
 0x1cf   : > { %1887 = vmatprep.subr.bf16.mxu1 %v3027_v8  ;;  %1874 = vmatprep.mubr.bf16.mxu0 %v963_v40  ;;  %v3069_v40 = vld [vmem:[#allocation9 + $0x3ec] ss:$16 sps:$4 sm:$0xff]   ;;  %v3106_v8 = vld [vmem:[#allocation9 + $0x108] ss:$16 sps:$4 sm:$0xff]  }
 0x1d0   : > { %1917 = vmatprep.mubr.bf16.mxu1 %v965_v41  ;;  %v3064_v41 = vld [vmem:[#allocation9 + $0x1e8] ss:$16 sps:$4 sm:$0xff]   ;;  %v3111_v7 = vld [vmem:[#allocation9 + $0x30c] ss:$16 sps:$4 sm:$0xff]  }
 0x1d1   : > { %1845 = vmatpush1.bf16.msra.mxu0 %v3022_v9  ;;  %v3109_v9 = vld [vmem:[#allocation9 + $0x308] ss:$16 sps:$4 sm:$0xff]  }
 0x1d2   : > { %1888 = vmatpush1.bf16.msra.mxu1 %v3025_v12  ;;  %1846 = vmatprep.subr.bf16.mxu0 %v3030_v13  ;;  %v3112_v12 = vld [vmem:[#allocation11 + $0x78] sm:$0xff]  }
 0x1d3   : > { %1889 = vmatprep.subr.bf16.mxu1 %v3033_v14  ;;  %v3113_v13 = vld [vmem:[#allocation11 + $0x38] sm:$0xff]   ;;  %v3114_v14 = vld [vmem:[#allocation11 + $0x70] sm:$0xff]  }
 0x1d5   : > { %1847 = vmatpush1.bf16.msra.mxu0 %v3028_v15  ;;  %v3115_v15 = vld [vmem:[#allocation11 + $0x30] sm:$0xff]  }
 0x1d6   : > { %1890 = vmatpush1.bf16.msra.mxu1 %v3031_v16  ;;  %1848 = vmatprep.subr.bf16.mxu0 %v3036_v17  ;;  %v3116_v16 = vld [vmem:[#allocation11 + $0x68] sm:$0xff]  }
 0x1d7   : > { %1891 = vmatprep.subr.bf16.mxu1 %v3039_v18  ;;  %v3117_v17 = vld [vmem:[#allocation11 + $0x28] sm:$0xff]   ;;  %v3118_v18 = vld [vmem:[#allocation11 + $0x60] sm:$0xff]  }
 0x1d9   : > { %1849 = vmatpush1.bf16.msra.mxu0 %v3034_v19  ;;  %v3119_v19 = vld [vmem:[#allocation11 + $0x20] sm:$0xff]  }
 0x1da   : > { %1892 = vmatpush1.bf16.msra.mxu1 %v3037_v20  ;;  %1850 = vmatprep.subr.bf16.mxu0 %v3042_v21  ;;  %v3120_v20 = vld [vmem:[#allocation11 + $0x58] sm:$0xff]  }
 0x1db   : > { %1893 = vmatprep.subr.bf16.mxu1 %v3045_v22  ;;  %v3121_v21 = vld [vmem:[#allocation11 + $0x18] sm:$0xff]   ;;  %v3122_v22 = vld [vmem:[#allocation11 + $0x50] sm:$0xff]  }
 0x1dd   : > { %1851 = vmatpush1.bf16.msra.mxu0 %v3040_v23  ;;  %v3128_v23 = vld [vmem:[#allocation11 + $0xf8] sm:$0xff]  }
 0x1de   : > { %1894 = vmatpush1.bf16.msra.mxu1 %v3043_v24  ;;  %1852 = vmatprep.subr.bf16.mxu0 %v3048_v25  ;;  %v3130_v24 = vld [vmem:[#allocation11 + $0xf0] sm:$0xff]   ;;  %v3124_v25 = vld [vmem:[#allocation11 + $0x48] sm:$0xff]  }
 0x1df   : > { %1895 = vmatprep.subr.bf16.mxu1 %v3051_v26  ;;  %v3131_v26 = vld [vmem:[#allocation11 + $0xb0] sm:$0xff]  }
 0x1e1   : > { %1853 = vmatpush1.bf16.msra.mxu0 %v3046_v27  ;;  %v3132_v27 = vld [vmem:[#allocation11 + $0xe8] sm:$0xff]  }
 0x1e2   : > { %1896 = vmatpush1.bf16.msra.mxu1 %v3049_v28  ;;  %1854 = vmatprep.subr.bf16.mxu0 %v3054_v29  ;;  %v3125_v28 = vld [vmem:[#allocation11 + $0x8] sm:$0xff]   ;;  %v3126_v29 = vld [vmem:[#allocation11 + $0x40] sm:$0xff]  }
 0x1e3   : > { %1897 = vmatprep.subr.bf16.mxu1 %v3057_v32  ;;  %v3133_v32 = vld [vmem:[#allocation11 + $0xa8] sm:$0xff]  }
 0x1e5   : > { %1855 = vmatpush1.bf16.msra.mxu0 %v3052_v33  ;;  %v3134_v33 = vld [vmem:[#allocation11 + $0xe0] sm:$0xff]  }
 0x1e6   : > { %1898 = vmatpush1.bf16.msra.mxu1 %v3055_v34  ;;  %1856 = vmatprep.subr.bf16.mxu0 %v3060_v35  ;;  %v3127_v34 = vld [vmem:[#allocation11] sm:$0xff]  }
 0x1e7   : > { %1899 = vmatprep.subr.bf16.mxu1 %v3063_v36  ;;  %v3135_v35 = vld [vmem:[#allocation11 + $0xa0] sm:$0xff]   ;;  %v3136_v36 = vld [vmem:[#allocation11 + $0xd8] sm:$0xff]  }
 0x1e9   : > { %1857 = vmatpush1.bf16.msra.mxu0 %v3058_v37  ;;  %v3137_v37 = vld [vmem:[#allocation11 + $0x98] sm:$0xff]  }
 0x1ea   : > { %1900 = vmatpush1.bf16.msra.mxu1 %v3061_v38  ;;  %1858 = vmatprep.subr.bf16.mxu0 %v3066_v39  ;;  %v3138_v38 = vld [vmem:[#allocation11 + $0xd0] sm:$0xff]  }
 0x1eb   : > { %1901 = vmatprep.subr.bf16.mxu1 %v3069_v40  ;;  %v3139_v39 = vld [vmem:[#allocation11 + $0x90] sm:$0xff]   ;;  %v3140_v40 = vld [vmem:[#allocation11 + $0xc8] sm:$0xff]  }
 0x1ed   : > { %1859 = vmatpush2.bf16.msra.mxu0 %v3064_v41  ;;  %v3141_v41 = vld [vmem:[#allocation11 + $0x88] sm:$0xff]  }
 0x1ee   : > { %1902 = vmatpush2.bf16.msra.mxu1 %v3067_v42  ;;  %1860 = vmatprep.subr.bf16.mxu0 %v3072_v43  ;;  %v3142_v42 = vld [vmem:[#allocation11 + $0xc0] sm:$0xff]  }
 0x1ef   : > { %1903 = vmatprep.subr.bf16.mxu1 %v3075_v44  ;;  %v3143_v43 = vld [vmem:[#allocation11 + $0x80] sm:$0xff]   ;;  %v1094_v44 = vld [vmem:[%s3719_s4] sm:$0xf] }
 0x1f1   : > { %1861 = vmatpush2.bf16.msra.mxu0 %v3070_v45  ;;  %v1103_v45 = vrot.slane %v1094_v44, %v932_v10 }
 0x1f2   : > { %1904 = vmatpush2.bf16.msra.mxu1 %v3073_v46  ;;  %1862 = vmatprep.subr.bf16.mxu0 %v3078_v47  ;;  %v1099_v46 = vrot.slane %v1094_v44, %v928_v30 }
 0x1f3   : > { %1905 = vmatprep.subr.bf16.mxu1 %v3081_v48 }
 0x1f5   : > { %1863 = vmatpush2.bf16.msra.mxu0 %v3076_v49 }
 0x1f6   : > { %1906 = vmatpush2.bf16.msra.mxu1 %v3079_v50  ;;  %1864 = vmatprep.subr.bf16.mxu0 %v3084_v51 }
 0x1f7   : > { %1907 = vmatprep.subr.bf16.mxu1 %v3087_v52 }
 0x1f9   : > { %1865 = vmatpush2.bf16.msra.mxu0 %v3082_v53 }
 0x1fa   : > { %1908 = vmatpush2.bf16.msra.mxu1 %v3085_v54  ;;  %1866 = vmatprep.subr.bf16.mxu0 %v3090_v55 }
 0x1fb   : > { %1909 = vmatprep.subr.bf16.mxu1 %v3093_v56 }
 0x1fd   : > { %1867 = vmatpush2.bf16.msra.mxu0 %v3088_v57 }
 0x1fe   : > { %1910 = vmatpush2.bf16.msra.mxu1 %v3091_v58  ;;  %1868 = vmatprep.subr.bf16.mxu0 %v3096_v59 }
 0x1ff   : > { %1911 = vmatprep.subr.bf16.mxu1 %v3099_v60 }
 0x201   : > { %1869 = vmatpush2.bf16.msra.mxu0 %v3094_v61 }
 0x202   : > { %1912 = vmatpush2.bf16.msra.mxu1 %v3097_v62  ;;  %1870 = vmatprep.subr.bf16.mxu0 %v3102_v63 }
 0x203   : > { %1913 = vmatprep.subr.bf16.mxu1 %v3105_v0 }
 0x205   : > { %1871 = vmatpush2.bf16.msra.mxu0 %v3100_v1 }
 0x206   : > { %1914 = vmatpush2.bf16.msra.mxu1 %v3103_v4  ;;  %1872 = vmatprep.subr.bf16.mxu0 %v3108_v6  ;;  %v1111_v6 = vrot.slane %v1094_v44, %v940_v11 }
 0x207   : > { %1915 = vmatprep.subr.bf16.mxu1 %v3111_v7  ;;  %v1107_v7 = vrot.slane %v1094_v44, %v936_v31 }
 0x209   : > { %1873 = vmatpush2.bf16.msra.mxu0 %v3106_v8 }
 0x20a   : > { %1916 = vmatpush2.bf16.msra.mxu1 %v3109_v9  ;;  %2669 = vmatprep.subr.bf16.mxu0 %v3112_v12 }
 0x20b   : > { %2691 = vmatprep.subr.bf16.mxu1 %v3128_v23 }
 0x20c   : > { %1875 = vmatmul.mubr.bf16.vlgmr.msra.gmra.mxu0 %v3663_v2  ;;  %v3129_v2 = vld [vmem:[#allocation11 + $0xb8] sm:$0xff]  }
 0x20d   : > { %1918 = vmatmul.mubr.bf16.vlgmr.msra.gmra.mxu1 %v3665_v3  ;;  %2670 = vmatpush3.bf16.msra.mxu0 %v3113_v13  ;;  %v3123_v3 = vld [vmem:[#allocation11 + $0x10] sm:$0xff]  }
 0x20e   : > { %2671 = vmatprep.subr.bf16.mxu0 %v3114_v14  ;;  %2692 = vmatpush3.bf16.msra.mxu1 %v3129_v2 }
 0x20f   : > { %2693 = vmatprep.subr.bf16.mxu1 %v3130_v24 }
 0x211   : > { %2672 = vmatpush3.bf16.msra.mxu0 %v3115_v15 }
 0x212   : > { %2673 = vmatprep.subr.bf16.mxu0 %v3116_v16  ;;  %2694 = vmatpush3.bf16.msra.mxu1 %v3131_v26 }
 0x213   : > { %2695 = vmatprep.subr.bf16.mxu1 %v3132_v27 }
 0x215   : > { %2674 = vmatpush3.bf16.msra.mxu0 %v3117_v17 }
 0x216   : > { %2675 = vmatprep.subr.bf16.mxu0 %v3118_v18  ;;  %2696 = vmatpush3.bf16.msra.mxu1 %v3133_v32 }
 0x217   : > { %2697 = vmatprep.subr.bf16.mxu1 %v3134_v33  ;;  %v2629_v33 = vld [vmem:[%s3721_s6] ss:$0 sm:$0xff] }
 0x219   : > { %2676 = vmatpush3.bf16.msra.mxu0 %v3119_v19 }
 0x21a   : > { %2677 = vmatprep.subr.bf16.mxu0 %v3120_v20  ;;  %2698 = vmatpush3.bf16.msra.mxu1 %v3135_v35 }
 0x21b   : > { %2699 = vmatprep.subr.bf16.mxu1 %v3136_v36 }
 0x21d   : > { %2678 = vmatpush3.bf16.msra.mxu0 %v3121_v21 }
 0x21e   : > { %2679 = vmatprep.subr.bf16.mxu0 %v3122_v22  ;;  %2700 = vmatpush3.bf16.msra.mxu1 %v3137_v37 }
 0x21f   : > { %2701 = vmatprep.subr.bf16.mxu1 %v3138_v38 }
 0x221   : > { %2680 = vmatpush3.bf16.msra.mxu0 %v3123_v3 }
 0x222   : > { %2681 = vmatprep.subr.bf16.mxu0 %v3124_v25  ;;  %2702 = vmatpush3.bf16.msra.mxu1 %v3139_v39 }
 0x223   : > { %2703 = vmatprep.subr.bf16.mxu1 %v3140_v40 }
 0x225   : > { %2682 = vmatpush3.bf16.msra.mxu0 %v3125_v28 }
 0x226   : > { %2683 = vmatprep.subr.bf16.mxu0 %v3126_v29  ;;  %2704 = vmatpush3.bf16.msra.mxu1 %v3141_v41 }
 0x227   : > { %2705 = vmatprep.subr.bf16.mxu1 %v3142_v42 }
 0x229   : > { %2684 = vmatpush3.bf16.msra.mxu0 %v3127_v34 }
 0x22a   : > { %2706 = vmatpush3.bf16.msra.mxu1 %v3143_v43 }
 0x28c   : > { %v1790_v47 = vpop.f32.mrf.mxu0 }
 0x28d   : > { %v1833_v48 = vpop.f32.mrf.mxu1  ;;  %v1791_v52 = vadd.f32 %v1790_v47, %v1099_v46 }
 0x28e   : > { %v1792_v49 = vpop.f32.mrf.mxu0 }
 0x28f   : > { %v1835_v50 = vpop.f32.mrf.mxu1  ;;  %v1793_v51 = vadd.f32 %v1792_v49, %v1103_v45  ;;  %v1834_v60 = vadd.f32 %v1833_v48, %v1791_v52 }
 0x290   : > { %v1794_v53 = vpop.f32.mrf.mxu0 }
 0x291   : > { %v1837_v54 = vpop.f32.mrf.mxu1  ;;  %v1795_v55 = vadd.f32 %v1794_v53, %v1099_v46  ;;  %v1836_v57 = vadd.f32 %v1835_v50, %v1793_v51  ;;  %v1928_v30 = vmax.f32 %v1834_v60, 0.0 }
 0x292   : > { %v1796_v56 = vpop.f32.mrf.mxu0 }
 0x293   : > { %v1838_v58 = vadd.f32 %v1837_v54, %v1795_v55  ;;  %v1797_v59 = vadd.f32 %v1796_v56, %v1103_v45  ;;  %v1839_v61 = vpop.f32.mrf.mxu1  ;;  %v1929_v63 = vmax.f32 %v1836_v57, 0.0 }
 0x295   : > { %v1840_v62 = vadd.f32 %v1839_v61, %v1797_v59  ;;  %v1932_v10 = vmax.f32 %v1838_v58, 0.0 }
 0x297   : > { %v1933_v0 = vmax.f32 %v1840_v62, 0.0  ;;  %v1936_v4 = vpack.c.bf16 %v1932_v10, %v1928_v30 }
 0x299   : > { %v1937_v1 = vpack.c.bf16 %v1933_v0, %v1929_v63 }
 0x29b   : > { %2235 = vmatprep.mubr.bf16.mxu0 %v1937_v1 }
 0x29c   : > { %2236 = vmatmul.mubr.bf16.vlgmr.msra.gmra.mxu0 %v1936_v4 }
 0x2cc   : > { %v1876_v8 = vpop.f32.mrf.mxu0 }
 0x2cd   : > { %v1919_v9 = vpop.f32.mrf.mxu1  ;;  %v1877_v15 = vadd.f32 %v1876_v8, %v1107_v7 }
 0x2ce   : > { %v1878_v12 = vpop.f32.mrf.mxu0 }
 0x2cf   : > { %v1921_v13 = vpop.f32.mrf.mxu1  ;;  %v1879_v14 = vadd.f32 %v1878_v12, %v1111_v6  ;;  %v1920_v23 = vadd.f32 %v1919_v9, %v1877_v15 }
 0x2d0   : > { %v1880_v16 = vpop.f32.mrf.mxu0 }
 0x2d1   : > { %v1923_v17 = vpop.f32.mrf.mxu1  ;;  %v1881_v18 = vadd.f32 %v1880_v16, %v1107_v7  ;;  %v1922_v20 = vadd.f32 %v1921_v13, %v1879_v14  ;;  %v1930_v31 = vmax.f32 %v1920_v23, 0.0 }
 0x2d2   : > { %v1882_v19 = vpop.f32.mrf.mxu0 }
 0x2d3   : > { %v1924_v21 = vadd.f32 %v1923_v17, %v1881_v18  ;;  %v1883_v22 = vadd.f32 %v1882_v19, %v1111_v6  ;;  %v1925_v2 = vpop.f32.mrf.mxu1  ;;  %v1931_v3 = vmax.f32 %v1922_v20, 0.0 }
 0x2d5   : > { %v1926_v24 = vadd.f32 %v1925_v2, %v1883_v22  ;;  %v1934_v11 = vmax.f32 %v1924_v21, 0.0 }
 0x2d7   : > { %v1935_v5 = vmax.f32 %v1926_v24, 0.0  ;;  %v1938_v26 = vpack.c.bf16 %v1934_v11, %v1930_v31 }
 0x2d9   : > { %v1939_v25 = vpack.c.bf16 %v1935_v5, %v1931_v3 }
 0x2db   : > { %2276 = vmatprep.mubr.bf16.mxu1 %v1939_v25 }
 0x2dc   : > { %2277 = vmatmul.mubr.bf16.vlgmr.msra.gmra.mxu1 %v1938_v26 }
 0x35c   : > { %v2685_v27 = vpop.f32.mrf.mxu0 }
 0x35e   : > { %v2686_v28 = vpop.f32.mrf.mxu0 }
 0x35f   : > { %v2687_v32 = vadd.f32 %v2686_v28, %v2685_v27 }
 0x360   : > { %v2688_v29 = vpop.f32.mrf.mxu0 }
 0x361   : > { %v2238_v37 = vadd.f32 %v2687_v32, %v2629_v33 }
 0x362   : > { %v2689_v34 = vpop.f32.mrf.mxu0 }
 0x363   : > { %v2690_v38 = vadd.f32 %v2689_v34, %v2688_v29 }
 0x365   : > { %v2241_v43 = vadd.f32 %v2690_v38, %v2629_v33 }
 0x39c   : > { %v2707_v35 = vpop.f32.mrf.mxu1 }
 0x39e   : > { %v2708_v36 = vpop.f32.mrf.mxu1 }
 0x39f   : > { %v2709_v39 = vadd.f32 %v2708_v36, %v2707_v35 }
 0x3a0   : > { %v2710_v40 = vpop.f32.mrf.mxu1 }
 0x3a1   : > { %v2279_v41 = vadd.f32 %v2709_v39, %v2238_v37 }
 0x3a2   : > { %v2711_v42 = vpop.f32.mrf.mxu1 }
 0x3a3   : > { %2285 = vst [vmem:[#allocation12] sm:$0xff] %v2279_v41  ;;  %v2712_v44 = vadd.f32 %v2711_v42, %v2710_v40 }
 0x3a5   : > { %v2282_v45 = vadd.f32 %v2712_v44, %v2241_v43 }
 0x3a7   : > { %2286 = vst [vmem:[#allocation12 + $0x8] sm:$0xff] %v2282_v45 }
 0x3a8 PF: > { %p2757_p9 = scmp.eq.s32.totalorder %s3455_s30, 2  ;;  %s3383_s8 = smov [#allocation12]  }
 0x3a9   : > { %s2296_s15 = sshll.u32 %s3383_s8, 4  ;;  %s2297_s15 = int_to_ptr.vmem [resolvable:$true] %s2296_s15 }
 0x3aa   : > { %s3278_s13 = scalar_lea.vmem %s2297_s15, 256  ;;  %p3285_p0 = scmp.lt.s32.totalorder %s2297_s15, %s2297_s15 }
 0x3ab   : > { %p3279_p4 = scmp.ne.s32.totalorder %s2297_s15, %s3278_s13  ;;  %p3286_p1 = scmp.lt.s32.totalorder %s3278_s13, %s3278_s13 }
 0x3ad   : > { %p3280_p13 = pnand %p3279_p4, %p2757_p9  ;;  %p3287_p5 = por %p3286_p1, %p3285_p0 }
 0x3af   : > { %p3281_p11 = pneg %p3280_p13 }
 0x3b1   : > { %p3288_p10 = pnand %p3287_p5, %p3281_p11 }
 0x3b3   : > { %3291 = shalt.err (!%p3288_p10)
}
 0x3b4   : > { %s3384_s12 = smov 128   ;;  %s3385_s24 = smov 8  }
 0x3b5   : > { %2730 = dma.vmem_to_hbm [thread:$0]  (%p2757_p9), %s2297_s15, 256, %s3722_s7, [#allocation5], %s3384_s12, %s3384_s12, %s3385_s24  }
 0x3b6   : > { %3343 = dma.done.wait (%p2757_p9), [#allocation5], 256  }
 0x3b7   : > { %3345 = vsyncadd (%p2757_p9), [#allocation5], 4294967040 }
 0x3b8 PF: > { %s25_s29 = sadd.s32 1, %s3368_s29   ;;  %s3753_s11 = sld [smem:[#allocation18_spill]] }
 0x3b9   : > { %p22_p12 = scmp.ge.s32.totalorder %s25_s29, 5   ;;  %s3754_s26 = sld [smem:[#allocation20_spill]] }
 0x3ba   : > { %s3755_s21 = sld [smem:[#allocation19_spill]]  ;;  %s3756_s24 = smov %s3352_s25 }
 0x3bb   : > { %s3758_s27 = smov %s3364_s28 }
 0x3bc   :  { %24 = sbr.rel (!%p22_p12) target bundleno = 13 (0xd), region = 119 }
 0x3be   : > { %s3757_s25 = smov %s3753_s11 }
 0x3c0   : > { %s3759_s28 = smov %s3755_s21 }
 0x3c1   :  { %2312 = vsyncpa [#allocation4], 1 }
 0x3c2   :  { %2314 = vsyncpa [#allocation4 + $0x1], 1 }
 0x3c3   :  { %2315 = vsyncpa [#allocation7], 1 }
 0x3c4   :  { %2317 = vsyncpa [#allocation7 + $0x1], 1 }
 0x3c5   :  { %2318 = vsyncpa [#allocation10], 1 }
 0x3c6   :  { %2319 = vsyncpa [#allocation5], 1 }
 0x3c7   :  { %2321 = vsyncpa [#allocation5 + $0x1], 1 }

</bundles_post_ra>
